<compile_context>
chip_gen: v7x
topology: tpu7x:2x2x1
jax: 0.10.0
libtpu: 0.0.40
codegen_flags: <defaults>
</compile_context>

<pallas_src>
import functools

import jax
import jax.numpy as jnp
from jax import lax
from jax.experimental import pallas as pl
from jax.experimental.pallas import tpu as pltpu


def _sigmoid(x):
    # Exact rewrite: sigmoid(x) = 0.5 * tanh(0.5 * x) + 0.5
    # (single EUP push + cheap VPU ops; f32-safe on v5e's f32-only EUP).
    return 0.5 * jnp.tanh(0.5 * x) + 0.5


def _decoder_kernel(S, H, unroll,
                    zx_ref,     # (S, 4H, Bb) f32  input-path pre-activations
                    whh_ref,    # (4H, H)     bf16 recurrent weight
                    wout_ref,   # (H, 1)      f32  fc_out weight (column)
                    bout_ref,   # (1, 1)      f32  fc_out bias (SMEM)
                    h0_ref,     # (H, Bb)     f32  encoder h0 (batch on lanes)
                    c0_ref,     # (H, Bb)     f32  encoder c0
                    out_ref):   # (S, Bb)     f32  residual predictions
    # Loop-invariant loads hoisted out of the recurrence.
    whh = whh_ref[...]          # tiny: 4H*H bf16
    wout = wout_ref[...]        # (H, 1)
    bout = bout_ref[0, 0]       # scalar from SMEM
    # TODO(synk): for large H, keep whh resident in the MXU with
    # pltpu.matmul_push_rhs / matmul_acc_lhs instead of jnp.dot per step, and
    # interleave 2 independent batch sub-blocks to hide the MXU->EUP latency.

    def step(t, carry):
        h, c = carry
        # True recurrence: one (4H,H)@(H,Bb) bf16 MXU matmul, f32 accumulate.
        z = zx_ref[t] + jnp.dot(whh, h.astype(jnp.bfloat16),
                                preferred_element_type=jnp.float32)   # (4H, Bb)
        # PyTorch gate order i, f, g, o; each slice is a sublane-aligned slab.
        i_g = _sigmoid(z[0 * H:1 * H, :])
        f_g = _sigmoid(z[1 * H:2 * H, :])
        g_g = jnp.tanh(z[2 * H:3 * H, :])
        o_g = _sigmoid(z[3 * H:4 * H, :])
        c_new = f_g * c + i_g * g_g
        h_new = o_g * jnp.tanh(c_new)
        # fc_out folded in: sublane (XLU) reduce over H; lane-dense row store.
        pred = jnp.sum(h_new * wout, axis=0, keepdims=True) + bout    # (1, Bb)
        out_ref[pl.ds(t, 1), :] = pred
        return h_new, c_new

    lax.fori_loop(0, S, step, (h0_ref[...], c0_ref[...]), unroll=unroll)


def bus_time_decoder(times, dist, sched, h0, c0, params, *, b_blk=128):
    B, S = times.shape
    H = params["we"].shape[0]          # stop_embedding.weight is (H, 3)
    assert H % 8 == 0, "H must be a multiple of 8 for sublane-aligned gates"
    # TODO(synk): pad H up to a multiple of 8 instead of asserting.

    # Lane-dense batch block; pad B up to a multiple of it.  With B > b_blk the
    # "parallel" grid axis gets >= 2 blocks and shards across v7x's two TCs.
    b_pad = pl.cdiv(B, b_blk) * b_blk
    n_blk = b_pad // b_blk

    # ---- fold stop_embedding + LSTM input projection + both biases ----
    # x_t = we @ feat + be ; z_x = wih @ x_t + bih + bhh
    #     = (wih @ we) @ feat + (wih @ be + bih + bhh)
    w_in = params["wih"] @ params["we"]                                   # (4H, 3)
    b_in = params["wih"] @ params["be"] + params["bih"] + params["bhh"]   # (4H,)

    feats = jnp.stack([times, dist, sched], axis=-1)                      # (B, S, 3)
    feats = jnp.pad(feats, ((0, b_pad - B), (0, 0), (0, 0)))              # (Bp, S, 3)
    # Pre-activations for ALL timesteps in one matmul; time-major, gate-major,
    # batch on lanes: (S, 4H, Bp).
    zx = (jnp.einsum("gk,bsk->sgb", w_in, feats)
          + b_in[None, :, None]).astype(jnp.float32)

    h0t = jnp.pad(h0, ((0, b_pad - B), (0, 0))).T                         # (H, Bp)
    c0t = jnp.pad(c0, ((0, b_pad - B), (0, 0))).T                         # (H, Bp)

    whh = params["whh"].astype(jnp.bfloat16)                              # (4H, H)
    wout = params["wout"].T.astype(jnp.float32)                           # (H, 1)
    bout = params["bout"].reshape(1, 1).astype(jnp.float32)               # (1, 1)

    # Explicit VMEM budget: double-buffered streamed blocks + resident weights,
    # 2x headroom, clamped under v7x's 64 MiB physical VMEM.
    f32 = 4
    need = (2 * (S * 4 * H * b_blk * f32        # zx block (double-buffered)
                 + 2 * H * b_blk * f32          # h0 + c0 blocks
                 + S * b_blk * f32)             # out block
            + 4 * H * H * 2 + H * f32)          # whh (bf16) + wout
    vmem_limit = int(min(max(2 * need, 8 << 20), 60 << 20))

    kernel = functools.partial(_decoder_kernel, S, H, min(S, 8))

    out_sb = pl.pallas_call(
        kernel,
        out_shape=jax.ShapeDtypeStruct((S, b_pad), jnp.float32),
        grid=(n_blk,),
        in_specs=[
            pl.BlockSpec((S, 4 * H, b_blk), lambda i: (0, 0, i)),   # zx
            pl.BlockSpec((4 * H, H), lambda i: (0, 0)),             # whh (bf16)
            pl.BlockSpec((H, 1), lambda i: (0, 0)),                 # wout
            pl.BlockSpec(memory_space=pltpu.MemorySpace.SMEM),      # bout
            pl.BlockSpec((H, b_blk), lambda i: (0, i)),             # h0 (H, Bp)
            pl.BlockSpec((H, b_blk), lambda i: (0, i)),             # c0 (H, Bp)
        ],
        out_specs=pl.BlockSpec((S, b_blk), lambda i: (0, i)),
        compiler_params=pltpu.CompilerParams(
            dimension_semantics=("parallel",),
            vmem_limit_bytes=vmem_limit),
    )(zx, whh, wout, bout, h0t, c0t)

    # Layout plumbing only: kernel emits time-major (S, Bp); module returns (B, S).
    return out_sb[:, :B].T


def ref_forward(times, dist, sched, h0, c0, params):
    """Pure-JAX reference matching the PyTorch forward pass (f32)."""
    H = params["we"].shape[0]
    feats = jnp.stack([times, dist, sched], axis=2)            # (B, S, 3)
    emb = feats @ params["we"].T + params["be"]                 # (B, S, H)

    def step(carry, x_t):
        h, c = carry
        z = (x_t @ params["wih"].T + h @ params["whh"].T
             + params["bih"] + params["bhh"])
        i_g = jax.nn.sigmoid(z[:, 0 * H:1 * H])
        f_g = jax.nn.sigmoid(z[:, 1 * H:2 * H])
        g_g = jnp.tanh(z[:, 2 * H:3 * H])
        o_g = jax.nn.sigmoid(z[:, 3 * H:4 * H])
        c = f_g * c + i_g * g_g
        h = o_g * jnp.tanh(c)
        return (h, c), h

    (_, _), hs = lax.scan(step, (h0, c0), jnp.swapaxes(emb, 0, 1))
    hs = jnp.swapaxes(hs, 0, 1)                                 # (B, S, H)
    out = hs @ params["wout"].T + params["bout"]                # (B, S, 1)
    return out[..., 0]


def init_params(key, hidden_dim, output_dim=1):
    """Deterministic synthetic parameters in PyTorch-native shapes."""
    H = hidden_dim
    ks = jax.random.split(key, 8)
    scale = 0.1
    return {
        "we":   scale * jax.random.normal(ks[0], (H, 3), jnp.float32),        # stop_embedding.weight
        "be":   scale * jax.random.normal(ks[1], (H,), jnp.float32),          # stop_embedding.bias
        "wih":  scale * jax.random.normal(ks[2], (4 * H, H), jnp.float32),    # lstm.weight_ih_l0
        "whh":  scale * jax.random.normal(ks[3], (4 * H, H), jnp.float32),    # lstm.weight_hh_l0
        "bih":  scale * jax.random.normal(ks[4], (4 * H,), jnp.float32),      # lstm.bias_ih_l0
        "bhh":  scale * jax.random.normal(ks[5], (4 * H,), jnp.float32),      # lstm.bias_hh_l0
        "wout": scale * jax.random.normal(ks[6], (output_dim, H), jnp.float32),  # fc_out.weight
        "bout": scale * jax.random.normal(ks[7], (output_dim,), jnp.float32),    # fc_out.bias
    }


if __name__ == "__main__":
    B, S, H = 2, 8, 32
    key = jax.random.PRNGKey(0)
    k_in, k_par = jax.random.split(key)
    k1, k2, k3, k4, k5 = jax.random.split(k_in, 5)

    target_times = jax.random.normal(k1, (B, S), jnp.float32)
    target_distances = jax.random.normal(k2, (B, S), jnp.float32)
    target_scheduled = jax.random.normal(k3, (B, S), jnp.float32)
    h0 = jax.random.normal(k4, (B, H), jnp.float32)   # encoder_hidden[0].squeeze(0)
    c0 = jax.random.normal(k5, (B, H), jnp.float32)   # encoder_hidden[1].squeeze(0)

    params = init_params(k_par, H)

    out = bus_time_decoder(target_times, target_distances, target_scheduled,
                           h0, c0, params)
    out = jax.block_until_ready(out)

    ref = ref_forward(target_times, target_distances, target_scheduled,
                      h0, c0, params)
    assert out.shape == (B, S)
    # bf16 MXU operands (whh, h) -> slightly looser tolerance than pure f32.
    assert jnp.allclose(out, ref, atol=1e-2, rtol=1e-2), (out, ref)

    print("KERNEL_OK")
</pallas_src>

<mosaic_0001>
module attributes {stable_mosaic.version = 11 : i64} {
  func.func @_decoder_kernel(%arg0: i32, %arg1: memref<8x128x128xf32, #tpu.memory_space<vmem>>, %arg2: memref<128x32xbf16, #tpu.memory_space<vmem>>, %arg3: memref<32x1xf32, #tpu.memory_space<vmem>>, %arg4: memref<1x1xf32, #tpu.memory_space<smem>>, %arg5: memref<32x128xf32, #tpu.memory_space<vmem>>, %arg6: memref<32x128xf32, #tpu.memory_space<vmem>>, %arg7: memref<8x128xf32, #tpu.memory_space<vmem>>) attributes {dimension_semantics = [#tpu.dimension_semantics<parallel>], iteration_bounds = array<i64: 1>, scalar_prefetch = 0 : i64, scratch_operands = 0 : i64, tpu.core_type = #tpu.core_type<tc>, window_params = [{transform_indices = @transform_0, window_bounds = array<i64: 8, 128, 128>}, {pipeline_mode = #tpu.pipeline_mode<synchronous>, transform_indices = @transform_1, window_bounds = array<i64: 128, 32>}, {pipeline_mode = #tpu.pipeline_mode<synchronous>, transform_indices = @transform_2, window_bounds = array<i64: 32, 1>}, {transform_indices = @transform_3, window_bounds = array<i64: 1, 1>}, {transform_indices = @transform_4, window_bounds = array<i64: 32, 128>}, {transform_indices = @transform_5, window_bounds = array<i64: 32, 128>}, {transform_indices = @transform_6, window_bounds = array<i64: 8, 128>}]} {
    %c0 = arith.constant 0 : index
    %c0_0 = arith.constant 0 : index
    %0 = vector.load %arg2[%c0, %c0_0] : memref<128x32xbf16, #tpu.memory_space<vmem>>, vector<128x32xbf16>
    %c0_1 = arith.constant 0 : index
    %c0_2 = arith.constant 0 : index
    %1 = vector.load %arg3[%c0_1, %c0_2] : memref<32x1xf32, #tpu.memory_space<vmem>>, vector<32x1xf32>
    %c0_3 = arith.constant 0 : index
    %c0_4 = arith.constant 0 : index
    %2 = memref.load %arg4[%c0_3, %c0_4] : memref<1x1xf32, #tpu.memory_space<smem>>
    %c0_5 = arith.constant 0 : index
    %c0_6 = arith.constant 0 : index
    %3 = vector.load %arg5[%c0_5, %c0_6] : memref<32x128xf32, #tpu.memory_space<vmem>>, vector<32x128xf32>
    %c0_7 = arith.constant 0 : index
    %c0_8 = arith.constant 0 : index
    %4 = vector.load %arg6[%c0_7, %c0_8] : memref<32x128xf32, #tpu.memory_space<vmem>>, vector<32x128xf32>
    %c0_i32 = arith.constant 0 : i32
    %5 = arith.index_cast %c0_i32 : i32 to index
    %c0_9 = arith.constant 0 : index
    %c0_10 = arith.constant 0 : index
    %6 = vector.load %arg1[%5, %c0_9, %c0_10] : memref<8x128x128xf32, #tpu.memory_space<vmem>>, vector<1x128x128xf32>
    %7 = vector.shape_cast %6 : vector<1x128x128xf32> to vector<128x128xf32>
    %8 = arith.truncf %3 : vector<32x128xf32> to vector<32x128xbf16>
    %cst = arith.constant dense<0.000000e+00> : vector<128x128xf32>
    %9 = tpu.matmul %0, %8, %cst {dimension_numbers = #tpu.dot_dimension_numbers<[1], [0], [0], [1], [0, 0, 1, 1], [], []>} : vector<128x32xbf16>, vector<32x128xbf16>, vector<128x128xf32> -> vector<128x128xf32>
    %10 = arith.addf %7, %9 : vector<128x128xf32>
    %11 = vector.extract_strided_slice %10 {offsets = [0, 0], sizes = [32, 128], strides = [1, 1]} : vector<128x128xf32> to vector<32x128xf32>
    %cst_11 = arith.constant 5.000000e-01 : f32
    %12 = vector.broadcast %cst_11 : f32 to vector<32x128xf32>
    %13 = arith.mulf %12, %11 : vector<32x128xf32>
    %14 = math.tanh %13 : vector<32x128xf32>
    %cst_12 = arith.constant 5.000000e-01 : f32
    %15 = vector.broadcast %cst_12 : f32 to vector<32x128xf32>
    %16 = arith.mulf %15, %14 : vector<32x128xf32>
    %cst_13 = arith.constant 5.000000e-01 : f32
    %17 = vector.broadcast %cst_13 : f32 to vector<32x128xf32>
    %18 = arith.addf %16, %17 : vector<32x128xf32>
    %19 = vector.extract_strided_slice %10 {offsets = [32, 0], sizes = [32, 128], strides = [1, 1]} : vector<128x128xf32> to vector<32x128xf32>
    %cst_14 = arith.constant 5.000000e-01 : f32
    %20 = vector.broadcast %cst_14 : f32 to vector<32x128xf32>
    %21 = arith.mulf %20, %19 : vector<32x128xf32>
    %22 = math.tanh %21 : vector<32x128xf32>
    %cst_15 = arith.constant 5.000000e-01 : f32
    %23 = vector.broadcast %cst_15 : f32 to vector<32x128xf32>
    %24 = arith.mulf %23, %22 : vector<32x128xf32>
    %cst_16 = arith.constant 5.000000e-01 : f32
    %25 = vector.broadcast %cst_16 : f32 to vector<32x128xf32>
    %26 = arith.addf %24, %25 : vector<32x128xf32>
    %27 = vector.extract_strided_slice %10 {offsets = [64, 0], sizes = [32, 128], strides = [1, 1]} : vector<128x128xf32> to vector<32x128xf32>
    %28 = math.tanh %27 : vector<32x128xf32>
    %29 = vector.extract_strided_slice %10 {offsets = [96, 0], sizes = [32, 128], strides = [1, 1]} : vector<128x128xf32> to vector<32x128xf32>
    %cst_17 = arith.constant 5.000000e-01 : f32
    %30 = vector.broadcast %cst_17 : f32 to vector<32x128xf32>
    %31 = arith.mulf %30, %29 : vector<32x128xf32>
    %32 = math.tanh %31 : vector<32x128xf32>
    %cst_18 = arith.constant 5.000000e-01 : f32
    %33 = vector.broadcast %cst_18 : f32 to vector<32x128xf32>
    %34 = arith.mulf %33, %32 : vector<32x128xf32>
    %cst_19 = arith.constant 5.000000e-01 : f32
    %35 = vector.broadcast %cst_19 : f32 to vector<32x128xf32>
    %36 = arith.addf %34, %35 : vector<32x128xf32>
    %37 = arith.mulf %26, %4 : vector<32x128xf32>
    %38 = arith.mulf %18, %28 : vector<32x128xf32>
    %39 = arith.addf %37, %38 : vector<32x128xf32>
    %40 = math.tanh %39 : vector<32x128xf32>
    %41 = arith.mulf %36, %40 : vector<32x128xf32>
    %42 = vector.broadcast %1 : vector<32x1xf32> to vector<32x128xf32>
    %43 = arith.mulf %41, %42 : vector<32x128xf32>
    %cst_20 = arith.constant dense<0.000000e+00> : vector<128xf32>
    %44 = vector.multi_reduction <add>, %43, %cst_20 [0] : vector<32x128xf32> to vector<128xf32>
    %45 = vector.shape_cast %44 : vector<128xf32> to vector<1x128xf32>
    %46 = vector.broadcast %2 : f32 to vector<1x128xf32>
    %47 = arith.addf %45, %46 : vector<1x128xf32>
    %48 = arith.index_cast %c0_i32 : i32 to index
    %c0_21 = arith.constant 0 : index
    %49 = vector.load %arg7[%48, %c0_21] : memref<8x128xf32, #tpu.memory_space<vmem>>, vector<1x128xf32>
    tpu.vector_store %arg7[%48, %c0_21], %47 {strides = array<i32>} : memref<8x128xf32, #tpu.memory_space<vmem>>, vector<1x128xf32>,
    %c1_i32 = arith.constant 1 : i32
    %50 = arith.index_cast %c1_i32 : i32 to index
    %c0_22 = arith.constant 0 : index
    %c0_23 = arith.constant 0 : index
    %51 = vector.load %arg1[%50, %c0_22, %c0_23] : memref<8x128x128xf32, #tpu.memory_space<vmem>>, vector<1x128x128xf32>
    %52 = vector.shape_cast %51 : vector<1x128x128xf32> to vector<128x128xf32>
    %53 = arith.truncf %41 : vector<32x128xf32> to vector<32x128xbf16>
    %cst_24 = arith.constant dense<0.000000e+00> : vector<128x128xf32>
    %54 = tpu.matmul %0, %53, %cst_24 {dimension_numbers = #tpu.dot_dimension_numbers<[1], [0], [0], [1], [0, 0, 1, 1], [], []>} : vector<128x32xbf16>, vector<32x128xbf16>, vector<128x128xf32> -> vector<128x128xf32>
    %55 = arith.addf %52, %54 : vector<128x128xf32>
    %56 = vector.extract_strided_slice %55 {offsets = [0, 0], sizes = [32, 128], strides = [1, 1]} : vector<128x128xf32> to vector<32x128xf32>
    %cst_25 = arith.constant 5.000000e-01 : f32
    %57 = vector.broadcast %cst_25 : f32 to vector<32x128xf32>
    %58 = arith.mulf %57, %56 : vector<32x128xf32>
    %59 = math.tanh %58 : vector<32x128xf32>
    %cst_26 = arith.constant 5.000000e-01 : f32
    %60 = vector.broadcast %cst_26 : f32 to vector<32x128xf32>
    %61 = arith.mulf %60, %59 : vector<32x128xf32>
    %cst_27 = arith.constant 5.000000e-01 : f32
    %62 = vector.broadcast %cst_27 : f32 to vector<32x128xf32>
    %63 = arith.addf %61, %62 : vector<32x128xf32>
    %64 = vector.extract_strided_slice %55 {offsets = [32, 0], sizes = [32, 128], strides = [1, 1]} : vector<128x128xf32> to vector<32x128xf32>
    %cst_28 = arith.constant 5.000000e-01 : f32
    %65 = vector.broadcast %cst_28 : f32 to vector<32x128xf32>
    %66 = arith.mulf %65, %64 : vector<32x128xf32>
    %67 = math.tanh %66 : vector<32x128xf32>
    %cst_29 = arith.constant 5.000000e-01 : f32
    %68 = vector.broadcast %cst_29 : f32 to vector<32x128xf32>
    %69 = arith.mulf %68, %67 : vector<32x128xf32>
    %cst_30 = arith.constant 5.000000e-01 : f32
    %70 = vector.broadcast %cst_30 : f32 to vector<32x128xf32>
    %71 = arith.addf %69, %70 : vector<32x128xf32>
    %72 = vector.extract_strided_slice %55 {offsets = [64, 0], sizes = [32, 128], strides = [1, 1]} : vector<128x128xf32> to vector<32x128xf32>
    %73 = math.tanh %72 : vector<32x128xf32>
    %74 = vector.extract_strided_slice %55 {offsets = [96, 0], sizes = [32, 128], strides = [1, 1]} : vector<128x128xf32> to vector<32x128xf32>
    %cst_31 = arith.constant 5.000000e-01 : f32
    %75 = vector.broadcast %cst_31 : f32 to vector<32x128xf32>
    %76 = arith.mulf %75, %74 : vector<32x128xf32>
    %77 = math.tanh %76 : vector<32x128xf32>
    %cst_32 = arith.constant 5.000000e-01 : f32
    %78 = vector.broadcast %cst_32 : f32 to vector<32x128xf32>
    %79 = arith.mulf %78, %77 : vector<32x128xf32>
    %cst_33 = arith.constant 5.000000e-01 : f32
    %80 = vector.broadcast %cst_33 : f32 to vector<32x128xf32>
    %81 = arith.addf %79, %80 : vector<32x128xf32>
    %82 = arith.mulf %71, %39 : vector<32x128xf32>
    %83 = arith.mulf %63, %73 : vector<32x128xf32>
    %84 = arith.addf %82, %83 : vector<32x128xf32>
    %85 = math.tanh %84 : vector<32x128xf32>
    %86 = arith.mulf %81, %85 : vector<32x128xf32>
    %87 = vector.broadcast %1 : vector<32x1xf32> to vector<32x128xf32>
    %88 = arith.mulf %86, %87 : vector<32x128xf32>
    %cst_34 = arith.constant dense<0.000000e+00> : vector<128xf32>
    %89 = vector.multi_reduction <add>, %88, %cst_34 [0] : vector<32x128xf32> to vector<128xf32>
    %90 = vector.shape_cast %89 : vector<128xf32> to vector<1x128xf32>
    %91 = vector.broadcast %2 : f32 to vector<1x128xf32>
    %92 = arith.addf %90, %91 : vector<1x128xf32>
    %93 = arith.index_cast %c1_i32 : i32 to index
    %c0_35 = arith.constant 0 : index
    %94 = vector.load %arg7[%93, %c0_35] : memref<8x128xf32, #tpu.memory_space<vmem>>, vector<1x128xf32>
    tpu.vector_store %arg7[%93, %c0_35], %92 {strides = array<i32>} : memref<8x128xf32, #tpu.memory_space<vmem>>, vector<1x128xf32>,
    %c2_i32 = arith.constant 2 : i32
    %95 = arith.index_cast %c2_i32 : i32 to index
    %c0_36 = arith.constant 0 : index
    %c0_37 = arith.constant 0 : index
    %96 = vector.load %arg1[%95, %c0_36, %c0_37] : memref<8x128x128xf32, #tpu.memory_space<vmem>>, vector<1x128x128xf32>
    %97 = vector.shape_cast %96 : vector<1x128x128xf32> to vector<128x128xf32>
    %98 = arith.truncf %86 : vector<32x128xf32> to vector<32x128xbf16>
    %cst_38 = arith.constant dense<0.000000e+00> : vector<128x128xf32>
    %99 = tpu.matmul %0, %98, %cst_38 {dimension_numbers = #tpu.dot_dimension_numbers<[1], [0], [0], [1], [0, 0, 1, 1], [], []>} : vector<128x32xbf16>, vector<32x128xbf16>, vector<128x128xf32> -> vector<128x128xf32>
    %100 = arith.addf %97, %99 : vector<128x128xf32>
    %101 = vector.extract_strided_slice %100 {offsets = [0, 0], sizes = [32, 128], strides = [1, 1]} : vector<128x128xf32> to vector<32x128xf32>
    %cst_39 = arith.constant 5.000000e-01 : f32
    %102 = vector.broadcast %cst_39 : f32 to vector<32x128xf32>
    %103 = arith.mulf %102, %101 : vector<32x128xf32>
    %104 = math.tanh %103 : vector<32x128xf32>
    %cst_40 = arith.constant 5.000000e-01 : f32
    %105 = vector.broadcast %cst_40 : f32 to vector<32x128xf32>
    %106 = arith.mulf %105, %104 : vector<32x128xf32>
    %cst_41 = arith.constant 5.000000e-01 : f32
    %107 = vector.broadcast %cst_41 : f32 to vector<32x128xf32>
    %108 = arith.addf %106, %107 : vector<32x128xf32>
    %109 = vector.extract_strided_slice %100 {offsets = [32, 0], sizes = [32, 128], strides = [1, 1]} : vector<128x128xf32> to vector<32x128xf32>
    %cst_42 = arith.constant 5.000000e-01 : f32
    %110 = vector.broadcast %cst_42 : f32 to vector<32x128xf32>
    %111 = arith.mulf %110, %109 : vector<32x128xf32>
    %112 = math.tanh %111 : vector<32x128xf32>
    %cst_43 = arith.constant 5.000000e-01 : f32
    %113 = vector.broadcast %cst_43 : f32 to vector<32x128xf32>
    %114 = arith.mulf %113, %112 : vector<32x128xf32>
    %cst_44 = arith.constant 5.000000e-01 : f32
    %115 = vector.broadcast %cst_44 : f32 to vector<32x128xf32>
    %116 = arith.addf %114, %115 : vector<32x128xf32>
    %117 = vector.extract_strided_slice %100 {offsets = [64, 0], sizes = [32, 128], strides = [1, 1]} : vector<128x128xf32> to vector<32x128xf32>
    %118 = math.tanh %117 : vector<32x128xf32>
    %119 = vector.extract_strided_slice %100 {offsets = [96, 0], sizes = [32, 128], strides = [1, 1]} : vector<128x128xf32> to vector<32x128xf32>
    %cst_45 = arith.constant 5.000000e-01 : f32
    %120 = vector.broadcast %cst_45 : f32 to vector<32x128xf32>
    %121 = arith.mulf %120, %119 : vector<32x128xf32>
    %122 = math.tanh %121 : vector<32x128xf32>
    %cst_46 = arith.constant 5.000000e-01 : f32
    %123 = vector.broadcast %cst_46 : f32 to vector<32x128xf32>
    %124 = arith.mulf %123, %122 : vector<32x128xf32>
    %cst_47 = arith.constant 5.000000e-01 : f32
    %125 = vector.broadcast %cst_47 : f32 to vector<32x128xf32>
    %126 = arith.addf %124, %125 : vector<32x128xf32>
    %127 = arith.mulf %116, %84 : vector<32x128xf32>
    %128 = arith.mulf %108, %118 : vector<32x128xf32>
    %129 = arith.addf %127, %128 : vector<32x128xf32>
    %130 = math.tanh %129 : vector<32x128xf32>
    %131 = arith.mulf %126, %130 : vector<32x128xf32>
    %132 = vector.broadcast %1 : vector<32x1xf32> to vector<32x128xf32>
    %133 = arith.mulf %131, %132 : vector<32x128xf32>
    %cst_48 = arith.constant dense<0.000000e+00> : vector<128xf32>
    %134 = vector.multi_reduction <add>, %133, %cst_48 [0] : vector<32x128xf32> to vector<128xf32>
    %135 = vector.shape_cast %134 : vector<128xf32> to vector<1x128xf32>
    %136 = vector.broadcast %2 : f32 to vector<1x128xf32>
    %137 = arith.addf %135, %136 : vector<1x128xf32>
    %138 = arith.index_cast %c2_i32 : i32 to index
    %c0_49 = arith.constant 0 : index
    %139 = vector.load %arg7[%138, %c0_49] : memref<8x128xf32, #tpu.memory_space<vmem>>, vector<1x128xf32>
    tpu.vector_store %arg7[%138, %c0_49], %137 {strides = array<i32>} : memref<8x128xf32, #tpu.memory_space<vmem>>, vector<1x128xf32>,
    %c3_i32 = arith.constant 3 : i32
    %140 = arith.index_cast %c3_i32 : i32 to index
    %c0_50 = arith.constant 0 : index
    %c0_51 = arith.constant 0 : index
    %141 = vector.load %arg1[%140, %c0_50, %c0_51] : memref<8x128x128xf32, #tpu.memory_space<vmem>>, vector<1x128x128xf32>
    %142 = vector.shape_cast %141 : vector<1x128x128xf32> to vector<128x128xf32>
    %143 = arith.truncf %131 : vector<32x128xf32> to vector<32x128xbf16>
    %cst_52 = arith.constant dense<0.000000e+00> : vector<128x128xf32>
    %144 = tpu.matmul %0, %143, %cst_52 {dimension_numbers = #tpu.dot_dimension_numbers<[1], [0], [0], [1], [0, 0, 1, 1], [], []>} : vector<128x32xbf16>, vector<32x128xbf16>, vector<128x128xf32> -> vector<128x128xf32>
    %145 = arith.addf %142, %144 : vector<128x128xf32>
    %146 = vector.extract_strided_slice %145 {offsets = [0, 0], sizes = [32, 128], strides = [1, 1]} : vector<128x128xf32> to vector<32x128xf32>
    %cst_53 = arith.constant 5.000000e-01 : f32
    %147 = vector.broadcast %cst_53 : f32 to vector<32x128xf32>
    %148 = arith.mulf %147, %146 : vector<32x128xf32>
    %149 = math.tanh %148 : vector<32x128xf32>
    %cst_54 = arith.constant 5.000000e-01 : f32
    %150 = vector.broadcast %cst_54 : f32 to vector<32x128xf32>
    %151 = arith.mulf %150, %149 : vector<32x128xf32>
    %cst_55 = arith.constant 5.000000e-01 : f32
    %152 = vector.broadcast %cst_55 : f32 to vector<32x128xf32>
    %153 = arith.addf %151, %152 : vector<32x128xf32>
    %154 = vector.extract_strided_slice %145 {offsets = [32, 0], sizes = [32, 128], strides = [1, 1]} : vector<128x128xf32> to vector<32x128xf32>
    %cst_56 = arith.constant 5.000000e-01 : f32
    %155 = vector.broadcast %cst_56 : f32 to vector<32x128xf32>
    %156 = arith.mulf %155, %154 : vector<32x128xf32>
    %157 = math.tanh %156 : vector<32x128xf32>
    %cst_57 = arith.constant 5.000000e-01 : f32
    %158 = vector.broadcast %cst_57 : f32 to vector<32x128xf32>
    %159 = arith.mulf %158, %157 : vector<32x128xf32>
    %cst_58 = arith.constant 5.000000e-01 : f32
    %160 = vector.broadcast %cst_58 : f32 to vector<32x128xf32>
    %161 = arith.addf %159, %160 : vector<32x128xf32>
    %162 = vector.extract_strided_slice %145 {offsets = [64, 0], sizes = [32, 128], strides = [1, 1]} : vector<128x128xf32> to vector<32x128xf32>
    %163 = math.tanh %162 : vector<32x128xf32>
    %164 = vector.extract_strided_slice %145 {offsets = [96, 0], sizes = [32, 128], strides = [1, 1]} : vector<128x128xf32> to vector<32x128xf32>
    %cst_59 = arith.constant 5.000000e-01 : f32
    %165 = vector.broadcast %cst_59 : f32 to vector<32x128xf32>
    %166 = arith.mulf %165, %164 : vector<32x128xf32>
    %167 = math.tanh %166 : vector<32x128xf32>
    %cst_60 = arith.constant 5.000000e-01 : f32
    %168 = vector.broadcast %cst_60 : f32 to vector<32x128xf32>
    %169 = arith.mulf %168, %167 : vector<32x128xf32>
    %cst_61 = arith.constant 5.000000e-01 : f32
    %170 = vector.broadcast %cst_61 : f32 to vector<32x128xf32>
    %171 = arith.addf %169, %170 : vector<32x128xf32>
    %172 = arith.mulf %161, %129 : vector<32x128xf32>
    %173 = arith.mulf %153, %163 : vector<32x128xf32>
    %174 = arith.addf %172, %173 : vector<32x128xf32>
    %175 = math.tanh %174 : vector<32x128xf32>
    %176 = arith.mulf %171, %175 : vector<32x128xf32>
    %177 = vector.broadcast %1 : vector<32x1xf32> to vector<32x128xf32>
    %178 = arith.mulf %176, %177 : vector<32x128xf32>
    %cst_62 = arith.constant dense<0.000000e+00> : vector<128xf32>
    %179 = vector.multi_reduction <add>, %178, %cst_62 [0] : vector<32x128xf32> to vector<128xf32>
    %180 = vector.shape_cast %179 : vector<128xf32> to vector<1x128xf32>
    %181 = vector.broadcast %2 : f32 to vector<1x128xf32>
    %182 = arith.addf %180, %181 : vector<1x128xf32>
    %183 = arith.index_cast %c3_i32 : i32 to index
    %c0_63 = arith.constant 0 : index
    %184 = vector.load %arg7[%183, %c0_63] : memref<8x128xf32, #tpu.memory_space<vmem>>, vector<1x128xf32>
    tpu.vector_store %arg7[%183, %c0_63], %182 {strides = array<i32>} : memref<8x128xf32, #tpu.memory_space<vmem>>, vector<1x128xf32>,
    %c4_i32 = arith.constant 4 : i32
    %185 = arith.index_cast %c4_i32 : i32 to index
    %c0_64 = arith.constant 0 : index
    %c0_65 = arith.constant 0 : index
    %186 = vector.load %arg1[%185, %c0_64, %c0_65] : memref<8x128x128xf32, #tpu.memory_space<vmem>>, vector<1x128x128xf32>
    %187 = vector.shape_cast %186 : vector<1x128x128xf32> to vector<128x128xf32>
    %188 = arith.truncf %176 : vector<32x128xf32> to vector<32x128xbf16>
    %cst_66 = arith.constant dense<0.000000e+00> : vector<128x128xf32>
    %189 = tpu.matmul %0, %188, %cst_66 {dimension_numbers = #tpu.dot_dimension_numbers<[1], [0], [0], [1], [0, 0, 1, 1], [], []>} : vector<128x32xbf16>, vector<32x128xbf16>, vector<128x128xf32> -> vector<128x128xf32>
    %190 = arith.addf %187, %189 : vector<128x128xf32>
    %191 = vector.extract_strided_slice %190 {offsets = [0, 0], sizes = [32, 128], strides = [1, 1]} : vector<128x128xf32> to vector<32x128xf32>
    %cst_67 = arith.constant 5.000000e-01 : f32
    %192 = vector.broadcast %cst_67 : f32 to vector<32x128xf32>
    %193 = arith.mulf %192, %191 : vector<32x128xf32>
    %194 = math.tanh %193 : vector<32x128xf32>
    %cst_68 = arith.constant 5.000000e-01 : f32
    %195 = vector.broadcast %cst_68 : f32 to vector<32x128xf32>
    %196 = arith.mulf %195, %194 : vector<32x128xf32>
    %cst_69 = arith.constant 5.000000e-01 : f32
    %197 = vector.broadcast %cst_69 : f32 to vector<32x128xf32>
    %198 = arith.addf %196, %197 : vector<32x128xf32>
    %199 = vector.extract_strided_slice %190 {offsets = [32, 0], sizes = [32, 128], strides = [1, 1]} : vector<128x128xf32> to vector<32x128xf32>
    %cst_70 = arith.constant 5.000000e-01 : f32
    %200 = vector.broadcast %cst_70 : f32 to vector<32x128xf32>
    %201 = arith.mulf %200, %199 : vector<32x128xf32>
    %202 = math.tanh %201 : vector<32x128xf32>
    %cst_71 = arith.constant 5.000000e-01 : f32
    %203 = vector.broadcast %cst_71 : f32 to vector<32x128xf32>
    %204 = arith.mulf %203, %202 : vector<32x128xf32>
    %cst_72 = arith.constant 5.000000e-01 : f32
    %205 = vector.broadcast %cst_72 : f32 to vector<32x128xf32>
    %206 = arith.addf %204, %205 : vector<32x128xf32>
    %207 = vector.extract_strided_slice %190 {offsets = [64, 0], sizes = [32, 128], strides = [1, 1]} : vector<128x128xf32> to vector<32x128xf32>
    %208 = math.tanh %207 : vector<32x128xf32>
    %209 = vector.extract_strided_slice %190 {offsets = [96, 0], sizes = [32, 128], strides = [1, 1]} : vector<128x128xf32> to vector<32x128xf32>
    %cst_73 = arith.constant 5.000000e-01 : f32
    %210 = vector.broadcast %cst_73 : f32 to vector<32x128xf32>
    %211 = arith.mulf %210, %209 : vector<32x128xf32>
    %212 = math.tanh %211 : vector<32x128xf32>
    %cst_74 = arith.constant 5.000000e-01 : f32
    %213 = vector.broadcast %cst_74 : f32 to vector<32x128xf32>
    %214 = arith.mulf %213, %212 : vector<32x128xf32>
    %cst_75 = arith.constant 5.000000e-01 : f32
    %215 = vector.broadcast %cst_75 : f32 to vector<32x128xf32>
    %216 = arith.addf %214, %215 : vector<32x128xf32>
    %217 = arith.mulf %206, %174 : vector<32x128xf32>
    %218 = arith.mulf %198, %208 : vector<32x128xf32>
    %219 = arith.addf %217, %218 : vector<32x128xf32>
    %220 = math.tanh %219 : vector<32x128xf32>
    %221 = arith.mulf %216, %220 : vector<32x128xf32>
    %222 = vector.broadcast %1 : vector<32x1xf32> to vector<32x128xf32>
    %223 = arith.mulf %221, %222 : vector<32x128xf32>
    %cst_76 = arith.constant dense<0.000000e+00> : vector<128xf32>
    %224 = vector.multi_reduction <add>, %223, %cst_76 [0] : vector<32x128xf32> to vector<128xf32>
    %225 = vector.shape_cast %224 : vector<128xf32> to vector<1x128xf32>
    %226 = vector.broadcast %2 : f32 to vector<1x128xf32>
    %227 = arith.addf %225, %226 : vector<1x128xf32>
    %228 = arith.index_cast %c4_i32 : i32 to index
    %c0_77 = arith.constant 0 : index
    %229 = vector.load %arg7[%228, %c0_77] : memref<8x128xf32, #tpu.memory_space<vmem>>, vector<1x128xf32>
    tpu.vector_store %arg7[%228, %c0_77], %227 {strides = array<i32>} : memref<8x128xf32, #tpu.memory_space<vmem>>, vector<1x128xf32>,
    %c5_i32 = arith.constant 5 : i32
    %230 = arith.index_cast %c5_i32 : i32 to index
    %c0_78 = arith.constant 0 : index
    %c0_79 = arith.constant 0 : index
    %231 = vector.load %arg1[%230, %c0_78, %c0_79] : memref<8x128x128xf32, #tpu.memory_space<vmem>>, vector<1x128x128xf32>
    %232 = vector.shape_cast %231 : vector<1x128x128xf32> to vector<128x128xf32>
    %233 = arith.truncf %221 : vector<32x128xf32> to vector<32x128xbf16>
    %cst_80 = arith.constant dense<0.000000e+00> : vector<128x128xf32>
    %234 = tpu.matmul %0, %233, %cst_80 {dimension_numbers = #tpu.dot_dimension_numbers<[1], [0], [0], [1], [0, 0, 1, 1], [], []>} : vector<128x32xbf16>, vector<32x128xbf16>, vector<128x128xf32> -> vector<128x128xf32>
    %235 = arith.addf %232, %234 : vector<128x128xf32>
    %236 = vector.extract_strided_slice %235 {offsets = [0, 0], sizes = [32, 128], strides = [1, 1]} : vector<128x128xf32> to vector<32x128xf32>
    %cst_81 = arith.constant 5.000000e-01 : f32
    %237 = vector.broadcast %cst_81 : f32 to vector<32x128xf32>
    %238 = arith.mulf %237, %236 : vector<32x128xf32>
    %239 = math.tanh %238 : vector<32x128xf32>
    %cst_82 = arith.constant 5.000000e-01 : f32
    %240 = vector.broadcast %cst_82 : f32 to vector<32x128xf32>
    %241 = arith.mulf %240, %239 : vector<32x128xf32>
    %cst_83 = arith.constant 5.000000e-01 : f32
    %242 = vector.broadcast %cst_83 : f32 to vector<32x128xf32>
    %243 = arith.addf %241, %242 : vector<32x128xf32>
    %244 = vector.extract_strided_slice %235 {offsets = [32, 0], sizes = [32, 128], strides = [1, 1]} : vector<128x128xf32> to vector<32x128xf32>
    %cst_84 = arith.constant 5.000000e-01 : f32
    %245 = vector.broadcast %cst_84 : f32 to vector<32x128xf32>
    %246 = arith.mulf %245, %244 : vector<32x128xf32>
    %247 = math.tanh %246 : vector<32x128xf32>
    %cst_85 = arith.constant 5.000000e-01 : f32
    %248 = vector.broadcast %cst_85 : f32 to vector<32x128xf32>
    %249 = arith.mulf %248, %247 : vector<32x128xf32>
    %cst_86 = arith.constant 5.000000e-01 : f32
    %250 = vector.broadcast %cst_86 : f32 to vector<32x128xf32>
    %251 = arith.addf %249, %250 : vector<32x128xf32>
    %252 = vector.extract_strided_slice %235 {offsets = [64, 0], sizes = [32, 128], strides = [1, 1]} : vector<128x128xf32> to vector<32x128xf32>
    %253 = math.tanh %252 : vector<32x128xf32>
    %254 = vector.extract_strided_slice %235 {offsets = [96, 0], sizes = [32, 128], strides = [1, 1]} : vector<128x128xf32> to vector<32x128xf32>
    %cst_87 = arith.constant 5.000000e-01 : f32
    %255 = vector.broadcast %cst_87 : f32 to vector<32x128xf32>
    %256 = arith.mulf %255, %254 : vector<32x128xf32>
    %257 = math.tanh %256 : vector<32x128xf32>
    %cst_88 = arith.constant 5.000000e-01 : f32
    %258 = vector.broadcast %cst_88 : f32 to vector<32x128xf32>
    %259 = arith.mulf %258, %257 : vector<32x128xf32>
    %cst_89 = arith.constant 5.000000e-01 : f32
    %260 = vector.broadcast %cst_89 : f32 to vector<32x128xf32>
    %261 = arith.addf %259, %260 : vector<32x128xf32>
    %262 = arith.mulf %251, %219 : vector<32x128xf32>
    %263 = arith.mulf %243, %253 : vector<32x128xf32>
    %264 = arith.addf %262, %263 : vector<32x128xf32>
    %265 = math.tanh %264 : vector<32x128xf32>
    %266 = arith.mulf %261, %265 : vector<32x128xf32>
    %267 = vector.broadcast %1 : vector<32x1xf32> to vector<32x128xf32>
    %268 = arith.mulf %266, %267 : vector<32x128xf32>
    %cst_90 = arith.constant dense<0.000000e+00> : vector<128xf32>
    %269 = vector.multi_reduction <add>, %268, %cst_90 [0] : vector<32x128xf32> to vector<128xf32>
    %270 = vector.shape_cast %269 : vector<128xf32> to vector<1x128xf32>
    %271 = vector.broadcast %2 : f32 to vector<1x128xf32>
    %272 = arith.addf %270, %271 : vector<1x128xf32>
    %273 = arith.index_cast %c5_i32 : i32 to index
    %c0_91 = arith.constant 0 : index
    %274 = vector.load %arg7[%273, %c0_91] : memref<8x128xf32, #tpu.memory_space<vmem>>, vector<1x128xf32>
    tpu.vector_store %arg7[%273, %c0_91], %272 {strides = array<i32>} : memref<8x128xf32, #tpu.memory_space<vmem>>, vector<1x128xf32>,
    %c6_i32 = arith.constant 6 : i32
    %275 = arith.index_cast %c6_i32 : i32 to index
    %c0_92 = arith.constant 0 : index
    %c0_93 = arith.constant 0 : index
    %276 = vector.load %arg1[%275, %c0_92, %c0_93] : memref<8x128x128xf32, #tpu.memory_space<vmem>>, vector<1x128x128xf32>
    %277 = vector.shape_cast %276 : vector<1x128x128xf32> to vector<128x128xf32>
    %278 = arith.truncf %266 : vector<32x128xf32> to vector<32x128xbf16>
    %cst_94 = arith.constant dense<0.000000e+00> : vector<128x128xf32>
    %279 = tpu.matmul %0, %278, %cst_94 {dimension_numbers = #tpu.dot_dimension_numbers<[1], [0], [0], [1], [0, 0, 1, 1], [], []>} : vector<128x32xbf16>, vector<32x128xbf16>, vector<128x128xf32> -> vector<128x128xf32>
    %280 = arith.addf %277, %279 : vector<128x128xf32>
    %281 = vector.extract_strided_slice %280 {offsets = [0, 0], sizes = [32, 128], strides = [1, 1]} : vector<128x128xf32> to vector<32x128xf32>
    %cst_95 = arith.constant 5.000000e-01 : f32
    %282 = vector.broadcast %cst_95 : f32 to vector<32x128xf32>
    %283 = arith.mulf %282, %281 : vector<32x128xf32>
    %284 = math.tanh %283 : vector<32x128xf32>
    %cst_96 = arith.constant 5.000000e-01 : f32
    %285 = vector.broadcast %cst_96 : f32 to vector<32x128xf32>
    %286 = arith.mulf %285, %284 : vector<32x128xf32>
    %cst_97 = arith.constant 5.000000e-01 : f32
    %287 = vector.broadcast %cst_97 : f32 to vector<32x128xf32>
    %288 = arith.addf %286, %287 : vector<32x128xf32>
    %289 = vector.extract_strided_slice %280 {offsets = [32, 0], sizes = [32, 128], strides = [1, 1]} : vector<128x128xf32> to vector<32x128xf32>
    %cst_98 = arith.constant 5.000000e-01 : f32
    %290 = vector.broadcast %cst_98 : f32 to vector<32x128xf32>
    %291 = arith.mulf %290, %289 : vector<32x128xf32>
    %292 = math.tanh %291 : vector<32x128xf32>
    %cst_99 = arith.constant 5.000000e-01 : f32
    %293 = vector.broadcast %cst_99 : f32 to vector<32x128xf32>
    %294 = arith.mulf %293, %292 : vector<32x128xf32>
    %cst_100 = arith.constant 5.000000e-01 : f32
    %295 = vector.broadcast %cst_100 : f32 to vector<32x128xf32>
    %296 = arith.addf %294, %295 : vector<32x128xf32>
    %297 = vector.extract_strided_slice %280 {offsets = [64, 0], sizes = [32, 128], strides = [1, 1]} : vector<128x128xf32> to vector<32x128xf32>
    %298 = math.tanh %297 : vector<32x128xf32>
    %299 = vector.extract_strided_slice %280 {offsets = [96, 0], sizes = [32, 128], strides = [1, 1]} : vector<128x128xf32> to vector<32x128xf32>
    %cst_101 = arith.constant 5.000000e-01 : f32
    %300 = vector.broadcast %cst_101 : f32 to vector<32x128xf32>
    %301 = arith.mulf %300, %299 : vector<32x128xf32>
    %302 = math.tanh %301 : vector<32x128xf32>
    %cst_102 = arith.constant 5.000000e-01 : f32
    %303 = vector.broadcast %cst_102 : f32 to vector<32x128xf32>
    %304 = arith.mulf %303, %302 : vector<32x128xf32>
    %cst_103 = arith.constant 5.000000e-01 : f32
    %305 = vector.broadcast %cst_103 : f32 to vector<32x128xf32>
    %306 = arith.addf %304, %305 : vector<32x128xf32>
    %307 = arith.mulf %296, %264 : vector<32x128xf32>
    %308 = arith.mulf %288, %298 : vector<32x128xf32>
    %309 = arith.addf %307, %308 : vector<32x128xf32>
    %310 = math.tanh %309 : vector<32x128xf32>
    %311 = arith.mulf %306, %310 : vector<32x128xf32>
    %312 = vector.broadcast %1 : vector<32x1xf32> to vector<32x128xf32>
    %313 = arith.mulf %311, %312 : vector<32x128xf32>
    %cst_104 = arith.constant dense<0.000000e+00> : vector<128xf32>
    %314 = vector.multi_reduction <add>, %313, %cst_104 [0] : vector<32x128xf32> to vector<128xf32>
    %315 = vector.shape_cast %314 : vector<128xf32> to vector<1x128xf32>
    %316 = vector.broadcast %2 : f32 to vector<1x128xf32>
    %317 = arith.addf %315, %316 : vector<1x128xf32>
    %318 = arith.index_cast %c6_i32 : i32 to index
    %c0_105 = arith.constant 0 : index
    %319 = vector.load %arg7[%318, %c0_105] : memref<8x128xf32, #tpu.memory_space<vmem>>, vector<1x128xf32>
    tpu.vector_store %arg7[%318, %c0_105], %317 {strides = array<i32>} : memref<8x128xf32, #tpu.memory_space<vmem>>, vector<1x128xf32>,
    %c7_i32 = arith.constant 7 : i32
    %320 = arith.index_cast %c7_i32 : i32 to index
    %c0_106 = arith.constant 0 : index
    %c0_107 = arith.constant 0 : index
    %321 = vector.load %arg1[%320, %c0_106, %c0_107] : memref<8x128x128xf32, #tpu.memory_space<vmem>>, vector<1x128x128xf32>
    %322 = vector.shape_cast %321 : vector<1x128x128xf32> to vector<128x128xf32>
    %323 = arith.truncf %311 : vector<32x128xf32> to vector<32x128xbf16>
    %cst_108 = arith.constant dense<0.000000e+00> : vector<128x128xf32>
    %324 = tpu.matmul %0, %323, %cst_108 {dimension_numbers = #tpu.dot_dimension_numbers<[1], [0], [0], [1], [0, 0, 1, 1], [], []>} : vector<128x32xbf16>, vector<32x128xbf16>, vector<128x128xf32> -> vector<128x128xf32>
    %325 = arith.addf %322, %324 : vector<128x128xf32>
    %326 = vector.extract_strided_slice %325 {offsets = [0, 0], sizes = [32, 128], strides = [1, 1]} : vector<128x128xf32> to vector<32x128xf32>
    %cst_109 = arith.constant 5.000000e-01 : f32
    %327 = vector.broadcast %cst_109 : f32 to vector<32x128xf32>
    %328 = arith.mulf %327, %326 : vector<32x128xf32>
    %329 = math.tanh %328 : vector<32x128xf32>
    %cst_110 = arith.constant 5.000000e-01 : f32
    %330 = vector.broadcast %cst_110 : f32 to vector<32x128xf32>
    %331 = arith.mulf %330, %329 : vector<32x128xf32>
    %cst_111 = arith.constant 5.000000e-01 : f32
    %332 = vector.broadcast %cst_111 : f32 to vector<32x128xf32>
    %333 = arith.addf %331, %332 : vector<32x128xf32>
    %334 = vector.extract_strided_slice %325 {offsets = [32, 0], sizes = [32, 128], strides = [1, 1]} : vector<128x128xf32> to vector<32x128xf32>
    %cst_112 = arith.constant 5.000000e-01 : f32
    %335 = vector.broadcast %cst_112 : f32 to vector<32x128xf32>
    %336 = arith.mulf %335, %334 : vector<32x128xf32>
    %337 = math.tanh %336 : vector<32x128xf32>
    %cst_113 = arith.constant 5.000000e-01 : f32
    %338 = vector.broadcast %cst_113 : f32 to vector<32x128xf32>
    %339 = arith.mulf %338, %337 : vector<32x128xf32>
    %cst_114 = arith.constant 5.000000e-01 : f32
    %340 = vector.broadcast %cst_114 : f32 to vector<32x128xf32>
    %341 = arith.addf %339, %340 : vector<32x128xf32>
    %342 = vector.extract_strided_slice %325 {offsets = [64, 0], sizes = [32, 128], strides = [1, 1]} : vector<128x128xf32> to vector<32x128xf32>
    %343 = math.tanh %342 : vector<32x128xf32>
    %344 = vector.extract_strided_slice %325 {offsets = [96, 0], sizes = [32, 128], strides = [1, 1]} : vector<128x128xf32> to vector<32x128xf32>
    %cst_115 = arith.constant 5.000000e-01 : f32
    %345 = vector.broadcast %cst_115 : f32 to vector<32x128xf32>
    %346 = arith.mulf %345, %344 : vector<32x128xf32>
    %347 = math.tanh %346 : vector<32x128xf32>
    %cst_116 = arith.constant 5.000000e-01 : f32
    %348 = vector.broadcast %cst_116 : f32 to vector<32x128xf32>
    %349 = arith.mulf %348, %347 : vector<32x128xf32>
    %cst_117 = arith.constant 5.000000e-01 : f32
    %350 = vector.broadcast %cst_117 : f32 to vector<32x128xf32>
    %351 = arith.addf %349, %350 : vector<32x128xf32>
    %352 = arith.mulf %341, %309 : vector<32x128xf32>
    %353 = arith.mulf %333, %343 : vector<32x128xf32>
    %354 = arith.addf %352, %353 : vector<32x128xf32>
    %355 = math.tanh %354 : vector<32x128xf32>
    %356 = arith.mulf %351, %355 : vector<32x128xf32>
    %357 = vector.broadcast %1 : vector<32x1xf32> to vector<32x128xf32>
    %358 = arith.mulf %356, %357 : vector<32x128xf32>
    %cst_118 = arith.constant dense<0.000000e+00> : vector<128xf32>
    %359 = vector.multi_reduction <add>, %358, %cst_118 [0] : vector<32x128xf32> to vector<128xf32>
    %360 = vector.shape_cast %359 : vector<128xf32> to vector<1x128xf32>
    %361 = vector.broadcast %2 : f32 to vector<1x128xf32>
    %362 = arith.addf %360, %361 : vector<1x128xf32>
    %363 = arith.index_cast %c7_i32 : i32 to index
    %c0_119 = arith.constant 0 : index
    %364 = vector.load %arg7[%363, %c0_119] : memref<8x128xf32, #tpu.memory_space<vmem>>, vector<1x128xf32>
    tpu.vector_store %arg7[%363, %c0_119], %362 {strides = array<i32>} : memref<8x128xf32, #tpu.memory_space<vmem>>, vector<1x128xf32>,
    %c8_i32 = arith.constant 8 : i32
    return
  }
  func.func @transform_0(%arg0: i32) -> (i32, i32, i32) {
    %c0_i32 = arith.constant 0 : i32
    %c0_i32_0 = arith.constant 0 : i32
    %c0_i32_1 = arith.constant 0 : i32
    return %c0_i32, %c0_i32_0, %arg0 : i32, i32, i32
  }
  func.func @transform_1(%arg0: i32) -> (i32, i32) {
    %c0_i32 = arith.constant 0 : i32
    %c0_i32_0 = arith.constant 0 : i32
    %c0_i32_1 = arith.constant 0 : i32
    return %c0_i32, %c0_i32_0 : i32, i32
  }
  func.func @transform_2(%arg0: i32) -> (i32, i32) {
    %c0_i32 = arith.constant 0 : i32
    %c0_i32_0 = arith.constant 0 : i32
    %c0_i32_1 = arith.constant 0 : i32
    return %c0_i32, %c0_i32_0 : i32, i32
  }
  func.func @transform_3(%arg0: i32) -> (i32, i32) {
    %c0_i32 = arith.constant 0 : i32
    %c0_i32_0 = arith.constant 0 : i32
    %c0_i32_1 = arith.constant 0 : i32
    return %c0_i32, %c0_i32_0 : i32, i32
  }
  func.func @transform_4(%arg0: i32) -> (i32, i32) {
    %c0_i32 = arith.constant 0 : i32
    %c0_i32_0 = arith.constant 0 : i32
    return %c0_i32, %arg0 : i32, i32
  }
  func.func @transform_5(%arg0: i32) -> (i32, i32) {
    %c0_i32 = arith.constant 0 : i32
    %c0_i32_0 = arith.constant 0 : i32
    return %c0_i32, %arg0 : i32, i32
  }
  func.func @transform_6(%arg0: i32) -> (i32, i32) {
    %c0_i32 = arith.constant 0 : i32
    %c0_i32_0 = arith.constant 0 : i32
    return %c0_i32, %arg0 : i32, i32
  }
}

</mosaic_0001>

<bundles_post_ra>
// kernel: tpu_custom_call.1
= control target key start
LH: loop header
LB: loop body
LE: loop exit
PB: predicated region body
PF: predicated region fallthrough
CT: control target
= control target key end

     0   :  { %12 = vsyncpa [#allocation4], 0  ;;  %s3118_s0 = inlined_call_operand.hbm [shape: f32[8,128,128], index: 0, kind: input, shape index: {}]   ;;  %s3119_s1 = inlined_call_operand.vmem [shape: bf16[128,32], index: 1, kind: input, shape index: {}]   ;;  %s3120_s2 = inlined_call_operand.vmem [shape: f32[32,1], index: 2, kind: input, shape index: {}]   ;;  %s3121_s3 = inlined_call_operand.<no memory space> [shape: f32[1,1], index: 3, kind: input, shape index: {}]   ;;  %s3122_s4 = inlined_call_operand.vmem [shape: f32[32,128], index: 4, kind: input, shape index: {}]   ;;  %s3123_s5 = inlined_call_operand.vmem [shape: f32[32,128], index: 5, kind: input, shape index: {}]   ;;  %s3124_s6 = inlined_call_operand.hbm [shape: f32[8,128], index: 6, kind: output, shape index: {}]  }
   0x1   :  { %13 = vsyncpa [#allocation5], 0  ;;  %s2631_s21 = smov [#allocation3]   ;;  %s2583_s25 = scalar_lea.hbm %s3118_s0, 16384 }
   0x2   :  { %s19_s22 = sshll.u32 %s2631_s21, 4  ;;  %p2584_p0 = scmp.ne.s32.totalorder %s3118_s0, %s2583_s25  ;;  %s20_s22 = int_to_ptr.vmem [resolvable:$true] %s19_s22 }
   0x3   :  { %p2587_p1 = scmp.lt.u32.totalorder %s2583_s25, %s3118_s0 }
   0x5   :  { %p2589_p2 = pnand %p2587_p1, %p2584_p0 }
   0x7   :  { %2592 = shalt.err (!%p2589_p2)
}
   0x8   :  { %s2593_s30 = scalar_lea.vmem %s20_s22, 16384  ;;  %p2598_p4 = scmp.lt.s32.totalorder %s20_s22, %s20_s22 }
   0x9   :  { %p2594_p3 = scmp.ne.s32.totalorder %s20_s22, %s2593_s30  ;;  %p2599_p5 = scmp.lt.s32.totalorder %s2593_s30, %s2593_s30 }
   0xb   :  { %p2600_p6 = por %p2599_p5, %p2598_p4 }
   0xd   :  { %p2601_p7 = pnand %p2600_p6, %p2594_p3 }
   0xf   :  { %2604 = shalt.err (!%p2601_p7)
}
  0x10   :  { %s2632_s7 = smov 128   ;;  %s2633_s8 = smov 8  }
  0x11   :  { %25 = dma.hbm_to_vmem [thread:$0]  %s3118_s0, 16384, %s20_s22, [#allocation4], %s2632_s7, %s2632_s7, %s2633_s8  }
  0x12   :  { %2627 = dma.done.wait [#allocation4], 16384  }
  0x13   :  { %2628 = vsyncadd [#allocation4], 4294950912  ;;  %v2634_v0 = vmov 0   ;;  %v61_v1 = vld [vmem:[%s3122_s4] sm:$0xff]  ;;  %v62_v2 = vld [vmem:[%s3122_s4 + $0x8] sm:$0xff]  ;;  %vm127_vm0 = vcmask 261120  }
  0x14   :  { %2239 = vset.pattern.permute.xlu1 %v2634_v0  ;;  %2238 = vset.pattern.permute.xlu0 %v2634_v0  ;;  %v63_v3 = vld [vmem:[%s3122_s4 + $0x10] sm:$0xff]  ;;  %v85_v4 = vpack.c.bf16 %v62_v2, %v61_v1  ;;  %v64_v5 = vld [vmem:[%s3122_s4 + $0x18] sm:$0xff]  ;;  %v2698_v7 = vld [vmem:[%s3119_s1] sm:$0xff]  }
  0x15   :  { %v86_v6 = vpack.c.bf16 %v64_v5, %v63_v3  ;;  %2077 = vmatprep.mubr.msk.bf16.mxu0 %vm127_vm0, %v2698_v7  ;;  %2097 = vmatprep.mubr.msk.bf16.mxu1 %vm127_vm0, %v2698_v7  ;;  %v2707_v8 = vld [vmem:[%s3119_s1 + $0x8] sm:$0xff]   ;;  %v2712_v9 = vld [vmem:[%s3119_s1 + $0x10] sm:$0xff]   ;;  %v56_v11 = vld [vmem:[%s3120_s2] sm:$0xff] }
  0x16   :  { %2073 = vmatprep.subr.bf16.mxu0 %v85_v4  ;;  %v58_v10 = vld [vmem:[%s3120_s2 + $0x10] sm:$0xff]  ;;  %339 = vperm.xlu0 %2238, %v56_v11   ;;  %v59_v12 = vld [vmem:[%s3120_s2 + $0x18] sm:$0xff]  ;;  %v57_v13 = vld [vmem:[%s3120_s2 + $0x8] sm:$0xff] }
  0x17   :  { %2074 = vmatpush3.bf16.msra.mxu0 %v85_v4  ;;  %349 = vperm.xlu1 %2239, %v58_v10   ;;  %v2733_v14 = vld [vmem:[%s3119_s1 + $0x18] sm:$0xff]   ;;  %v2738_v15 = vld [vmem:[%s3119_s1 + $0x20] sm:$0xff]   ;;  %v2747_v16 = vld [vmem:[%s3119_s1 + $0x28] sm:$0xff]  }
  0x18   :  { %2075 = vmatprep.subr.bf16.mxu0 %v86_v6  ;;  %v2752_v17 = vld [vmem:[%s3119_s1 + $0x30] sm:$0xff]   ;;  %v2761_v18 = vld [vmem:[%s3119_s1 + $0x38] sm:$0xff]   ;;  %v69_v20 = vld [vmem:[#allocation3] sm:$0xff] }
  0x19   :  { %v71_v19 = vld [vmem:[#allocation3 + $0x10] sm:$0xff]  ;;  %v72_v22 = vld [vmem:[#allocation3 + $0x18] sm:$0xff]  ;;  %v70_v25 = vld [vmem:[#allocation3 + $0x8] sm:$0xff] }
  0x1a   :  { %344 = vperm.xlu0 %2238, %v57_v13   ;;  %v75_v33 = vld [vmem:[#allocation3 + $0x30] sm:$0xff]  ;;  %v73_v35 = vld [vmem:[#allocation3 + $0x20] sm:$0xff]  ;;  %v76_v38 = vld [vmem:[#allocation3 + $0x38] sm:$0xff] }
  0x1b   :  { %2076 = vmatpush3.bf16.msra.mxu0 %v86_v6  ;;  %354 = vperm.xlu1 %2239, %v59_v12   ;;  %v74_v41 = vld [vmem:[#allocation3 + $0x28] sm:$0xff]  ;;  %v79_v51 = vld [vmem:[#allocation3 + $0x50] sm:$0xff]  ;;  %v77_v52 = vld [vmem:[#allocation3 + $0x40] sm:$0xff] }
  0x1c   :  { %v80_v54 = vld [vmem:[#allocation3 + $0x58] sm:$0xff]  ;;  %v78_v57 = vld [vmem:[#allocation3 + $0x48] sm:$0xff]  ;;  %v83_v4 = vld [vmem:[#allocation3 + $0x70] sm:$0xff] }
  0x1d   :  { %v81_v6 = vld [vmem:[#allocation3 + $0x60] sm:$0xff] }
  0x1e   :  { %2078 = vmatmul.mubr.msk.bf16.vlgmr.msra.gmra.mrb[0].mxu0 %vm127_vm0, %v2707_v8 }
  0x1f   :  { %2081 = vmatprep.mubr.msk.bf16.mxu0 %vm127_vm0, %v2712_v9 }
  0x26   :  { %2082 = vmatmul.mubr.msk.bf16.gmra.mrb[4].mxu0 %vm127_vm0, %v2733_v14 }
  0x27   :  { %2085 = vmatprep.mubr.msk.bf16.mxu0 %vm127_vm0, %v2738_v15 }
  0x2e   :  { %2086 = vmatmul.mubr.msk.bf16.gmra.mrb[8].mxu0 %vm127_vm0, %v2747_v16 }
  0x2f   :  { %2089 = vmatprep.mubr.msk.bf16.mxu0 %vm127_vm0, %v2752_v17 }
  0x36   :  { %2090 = vmatmul.mubr.msk.bf16.gmra.mrb[12].mxu0 %vm127_vm0, %v2761_v18 }
  0x37   :  { %2117 = vmatprep.mubr.msk.bf16.mxu0 %vm127_vm0, %v2698_v7 }
  0xf1   :  { %v2079_v21 = vpop.f32.mrb[0].mxu0 }
  0xf2   :  { %v251_v23 = vadd.f32 %v2079_v21, %v71_v19  ;;  %v186_v24 = vpop.f32.mrb[1].mxu0  ;;  %v84_v19 = vld [vmem:[#allocation3 + $0x78] sm:$0xff] }
  0xf3   :  { %v249_v26 = vadd.f32 %v186_v24, %v69_v20  ;;  %v2080_v27 = vpop.f32.mrb[2].mxu0 }
  0xf4   :  { %v252_v28 = vadd.f32 %v2080_v27, %v72_v22  ;;  %v189_v29 = vpop.f32.mrb[3].mxu0  ;;  %v267_v30 = vmul.f32 0.5, %v251_v23 }
  0xf5   :  { %v250_v31 = vadd.f32 %v189_v29, %v70_v25  ;;  %v265_v32 = vmul.f32 0.5, %v249_v26  ;;  %v82_v26 = vld [vmem:[#allocation3 + $0x68] sm:$0xff] }
  0xf6   :  { %v268_v34 = vmul.f32 0.5, %v252_v28  ;;  %2248 = vtanh.f32 %v267_v30 }
  0xf7   :  { %v266_v36 = vmul.f32 0.5, %v250_v31  ;;  %2250 = vtanh.f32 %v265_v32 }
  0xf8   :  { %2252 = vtanh.f32 %v268_v34 }
  0xf9   :  { %v2083_v37 = vpop.f32.mrb[4].mxu0  ;;  %2254 = vtanh.f32 %v266_v36 }
  0xfa   :  { %v255_v39 = vadd.f32 %v2083_v37, %v75_v33  ;;  %v202_v40 = vpop.f32.mrb[5].mxu0  ;;  %v67_v33 = vld [vmem:[%s3123_s5 + $0x10] sm:$0xff] }
  0xfb   :  { %v253_v42 = vadd.f32 %v202_v40, %v73_v35  ;;  %v2084_v43 = vpop.f32.mrb[6].mxu0  ;;  %v65_v40 = vld [vmem:[%s3123_s5] sm:$0xff] }
  0xfc   :  { %v283_v44 = vmul.f32 0.5, %v255_v39  ;;  %v256_v45 = vadd.f32 %v2084_v43, %v76_v38  ;;  %v205_v46 = vpop.f32.mrb[7].mxu0 }
  0xfd   :  { %v281_v47 = vmul.f32 0.5, %v253_v42  ;;  %v254_v48 = vadd.f32 %v205_v46, %v74_v41  ;;  %v68_v46 = vld [vmem:[%s3123_s5 + $0x18] sm:$0xff] }
  0xfe   :  { %2256 = vtanh.f32 %v283_v44  ;;  %v284_v49 = vmul.f32 0.5, %v256_v45 }
  0xff   :  { %2258 = vtanh.f32 %v281_v47  ;;  %v282_v50 = vmul.f32 0.5, %v254_v48 }
 0x100   :  { %2260 = vtanh.f32 %v284_v49  ;;  %v2249_v58 = vpop.eup %2248 }
 0x101   :  { %2262 = vtanh.f32 %v282_v50  ;;  %v2087_v53 = vpop.f32.mrb[8].mxu0  ;;  %v2251_v63 = vpop.eup %2250  ;;  %v275_v2 = vmul.f32 0.5, %v2249_v58 }
 0x102   :  { %v259_v55 = vadd.f32 %v2087_v53, %v79_v51  ;;  %v218_v56 = vpop.f32.mrb[9].mxu0  ;;  %v2253_v1 = vpop.eup %2252  ;;  %v273_v11 = vmul.f32 0.5, %v2251_v63  ;;  %v66_v51 = vld [vmem:[%s3123_s5 + $0x8] sm:$0xff] }
 0x103   :  { %v257_v59 = vadd.f32 %v218_v56, %v77_v52  ;;  %v2088_v60 = vpop.f32.mrb[10].mxu0  ;;  %v2255_v3 = vpop.eup %2254  ;;  %v279_v21 = vadd.f32 0.5, %v275_v2  ;;  %v276_v22 = vmul.f32 0.5, %v2253_v1 }
 0x104   :  { %2264 = vtanh.f32 %v259_v55  ;;  %v260_v61 = vadd.f32 %v2088_v60, %v80_v54  ;;  %v221_v62 = vpop.f32.mrb[11].mxu0  ;;  %v274_v28 = vmul.f32 0.5, %v2255_v3  ;;  %v277_v39 = vadd.f32 0.5, %v273_v11  ;;  %v2791_v11 = vpop.permute.xlu0 %339 }
 0x105   :  { %2266 = vtanh.f32 %v257_v59  ;;  %v258_v0 = vadd.f32 %v221_v62, %v78_v57  ;;  %v280_v45 = vadd.f32 0.5, %v276_v22 }
 0x106   :  { %2268 = vtanh.f32 %v260_v61  ;;  %v278_v55 = vadd.f32 0.5, %v274_v28 }
 0x107   :  { %2270 = vtanh.f32 %v258_v0 }
 0x108   :  { %v2257_v5 = vpop.eup %2256 }
 0x109   :  { %v2259_v10 = vpop.eup %2258  ;;  %v291_v12 = vmul.f32 0.5, %v2257_v5  ;;  %v2091_v13 = vpop.f32.mrb[12].mxu0 }
 0x10a   :  { %v2261_v20 = vpop.eup %2260  ;;  %v289_v23 = vmul.f32 0.5, %v2259_v10  ;;  %v263_v24 = vadd.f32 %v2091_v13, %v83_v4  ;;  %v234_v25 = vpop.f32.mrb[13].mxu0 }
 0x10b   :  { %v2263_v27 = vpop.eup %2262  ;;  %v295_v29 = vadd.f32 0.5, %v291_v12  ;;  %v292_v30 = vmul.f32 0.5, %v2261_v20  ;;  %v261_v31 = vadd.f32 %v234_v25, %v81_v6  ;;  %v2092_v32 = vpop.f32.mrb[14].mxu0 }
 0x10c   :  { %v293_v34 = vadd.f32 0.5, %v289_v23  ;;  %v290_v35 = vmul.f32 0.5, %v2263_v27  ;;  %v303_v36 = vmul.f32 0.5, %v263_v24  ;;  %v264_v37 = vadd.f32 %v2092_v32, %v84_v19  ;;  %v237_v38 = vpop.f32.mrb[15].mxu0 }
 0x10d   :  { %v296_v41 = vadd.f32 0.5, %v292_v30  ;;  %v301_v42 = vmul.f32 0.5, %v261_v31  ;;  %v262_v43 = vadd.f32 %v237_v38, %v82_v26  ;;  %v319_v50 = vmul.f32 %v295_v29, %v67_v33  ;;  %v2793_v26 = vpop.permute.xlu1 %349  ;;  %v2795_v30 = vpop.permute.xlu0 %344 }
 0x10e   :  { %v2265_v44 = vpop.eup %2264  ;;  %v294_v47 = vadd.f32 0.5, %v290_v35  ;;  %2272 = vtanh.f32 %v303_v36  ;;  %v304_v48 = vmul.f32 0.5, %v264_v37  ;;  %v317_v56 = vmul.f32 %v293_v34, %v65_v40 }
 0x10f   :  { %v2267_v49 = vpop.eup %2266  ;;  %v323_v52 = vmul.f32 %v2265_v44, %v279_v21  ;;  %2274 = vtanh.f32 %v301_v42  ;;  %v302_v53 = vmul.f32 0.5, %v262_v43  ;;  %v320_v59 = vmul.f32 %v296_v41, %v68_v46 }
 0x110   :  { %v2269_v54 = vpop.eup %2268  ;;  %v321_v57 = vmul.f32 %v2267_v49, %v277_v39  ;;  %2276 = vtanh.f32 %v304_v48  ;;  %v318_v62 = vmul.f32 %v294_v47, %v66_v51  ;;  %v2810_v49 = vstv %s3121_s3 }
 0x111   :  { %v2271_v58 = vpop.eup %2270  ;;  %v2779_v60 = vadd.f32 %v323_v52, %v319_v50  ;;  %v324_v61 = vmul.f32 %v2269_v54, %v280_v45  ;;  %2278 = vtanh.f32 %v302_v53  ;;  %v2799_v38 = vpop.permute.xlu1 %354  ;;  %v376_v52 = vld [vmem:[#allocation3 + $0x90] sm:$0xff]  ;;  %v374_v53 = vld [vmem:[#allocation3 + $0x80] sm:$0xff] }
 0x112   :  { %v2781_v63 = vadd.f32 %v321_v57, %v317_v56  ;;  %v322_v0 = vmul.f32 %v2271_v58, %v278_v55  ;;  %v377_v55 = vld [vmem:[#allocation3 + $0x98] sm:$0xff]  ;;  %v375_v58 = vld [vmem:[#allocation3 + $0x88] sm:$0xff] }
 0x113   :  { %2280 = vtanh.f32 %v2779_v60  ;;  %v2784_v1 = vadd.f32 %v324_v61, %v320_v59 }
 0x114   :  { %v2786_v2 = vadd.f32 %v322_v0, %v318_v62  ;;  %2282 = vtanh.f32 %v2781_v63 }
 0x115   :  { %2284 = vtanh.f32 %v2784_v1 }
 0x116   :  { %2286 = vtanh.f32 %v2786_v2 }
 0x118   :  { %v2273_v3 = vpop.eup %2272 }
 0x119   :  { %v2275_v4 = vpop.eup %2274  ;;  %v311_v5 = vmul.f32 0.5, %v2273_v3 }
 0x11a   :  { %v2277_v6 = vpop.eup %2276  ;;  %v309_v10 = vmul.f32 0.5, %v2275_v4 }
 0x11b   :  { %v2279_v12 = vpop.eup %2278  ;;  %v312_v13 = vmul.f32 0.5, %v2277_v6  ;;  %v315_v19 = vadd.f32 0.5, %v311_v5  ;;  %v380_v6 = vld [vmem:[#allocation3 + $0xb0] sm:$0xff] }
 0x11c   :  { %v313_v20 = vadd.f32 0.5, %v309_v10  ;;  %v310_v21 = vmul.f32 0.5, %v2279_v12  ;;  %v378_v12 = vld [vmem:[#allocation3 + $0xa0] sm:$0xff] }
 0x11d   :  { %v2281_v22 = vpop.eup %2280  ;;  %v316_v23 = vadd.f32 0.5, %v312_v13 }
 0x11e   :  { %v2283_v24 = vpop.eup %2282  ;;  %v314_v25 = vadd.f32 0.5, %v310_v21  ;;  %v335_v31 = vmul.f32 %v2281_v22, %v315_v19 }
 0x11f   :  { %v2285_v27 = vpop.eup %2284  ;;  %v333_v28 = vmul.f32 %v2283_v24, %v313_v20  ;;  %v381_v20 = vld [vmem:[#allocation3 + $0xb8] sm:$0xff] }
 0x120   :  { %v2287_v29 = vpop.eup %2286  ;;  %v336_v32 = vmul.f32 %v2285_v27, %v316_v23  ;;  %v359_v40 = vmul.f32 %v2793_v26, %v335_v31  ;;  %v379_v23 = vld [vmem:[#allocation3 + $0xa8] sm:$0xff] }
 0x121   :  { %v334_v33 = vmul.f32 %v2287_v29, %v314_v25  ;;  %v357_v35 = vmul.f32 %v2791_v11, %v333_v28 }
 0x122   :  { %v391_v34 = vpack.c.bf16 %v336_v32, %v335_v31  ;;  %v360_v41 = vmul.f32 %v2799_v38, %v336_v32 }
 0x123   :  { %v358_v36 = vmul.f32 %v2795_v30, %v334_v33  ;;  %v390_v37 = vpack.c.bf16 %v334_v33, %v333_v28 }
 0x125   :  { %v361_v39 = vadd.f32 %v358_v36, %v357_v35  ;;  %2093 = vmatprep.subr.bf16.mxu1 %v390_v37  ;;  %v384_v35 = vld [vmem:[#allocation3 + $0xd0] sm:$0xff]  ;;  %v382_v36 = vld [vmem:[#allocation3 + $0xc0] sm:$0xff] }
 0x126   :  { %2094 = vmatpush3.bf16.msra.mxu1 %v390_v37 }
 0x127   :  { %v362_v42 = vadd.f32 %v361_v39, %v359_v40  ;;  %2095 = vmatprep.subr.bf16.mxu1 %v391_v34  ;;  %v385_v39 = vld [vmem:[#allocation3 + $0xd8] sm:$0xff] }
 0x129   :  { %v363_v43 = vadd.f32 %v362_v42, %v360_v41  ;;  %v383_v42 = vld [vmem:[#allocation3 + $0xc8] sm:$0xff] }
 0x12a   :  { %2096 = vmatpush3.bf16.msra.mxu1 %v391_v34 }
 0x12b   :  { %v364_v44 = vrot.slane %v363_v43, 4 }
 0x12d   :  { %v365_v45 = vadd.f32 %v364_v44, %v363_v43  ;;  %2098 = vmatmul.mubr.msk.bf16.vlgmr.msra.gmra.mrb[0].mxu1 %vm127_vm0, %v2707_v8 }
 0x12e   :  { %2101 = vmatprep.mubr.msk.bf16.mxu1 %vm127_vm0, %v2712_v9 }
 0x12f   :  { %v366_v46 = vrot.slane %v365_v45, 2 }
 0x131   :  { %v367_v47 = vadd.f32 %v366_v46, %v365_v45 }
 0x133   :  { %v368_v48 = vrot.slane %v367_v47, 1 }
 0x135   :  { %v369_v50 = vadd.f32 %v368_v48, %v367_v47  ;;  %2102 = vmatmul.mubr.msk.bf16.gmra.mrb[4].mxu1 %vm127_vm0, %v2733_v14 }
 0x136   :  { %2105 = vmatprep.mubr.msk.bf16.mxu1 %vm127_vm0, %v2738_v15 }
 0x137   :  { %v371_v51 = vadd.f32 %v2810_v49, %v369_v50 }
 0x139   :  { %372 = vst [vmem:[#allocation6] sm:$0x1] %v371_v51 }
 0x13d   :  { %2106 = vmatmul.mubr.msk.bf16.gmra.mrb[8].mxu1 %vm127_vm0, %v2747_v16 }
 0x13e   :  { %2109 = vmatprep.mubr.msk.bf16.mxu1 %vm127_vm0, %v2752_v17 }
 0x145   :  { %2110 = vmatmul.mubr.msk.bf16.gmra.mrb[12].mxu1 %vm127_vm0, %v2761_v18 }
 0x146   :  { %2137 = vmatprep.mubr.msk.bf16.mxu1 %vm127_vm0, %v2698_v7 }
 0x200   :  { %v2099_v54 = vpop.f32.mrb[0].mxu1 }
 0x201   :  { %v491_v56 = vadd.f32 %v2099_v54, %v376_v52  ;;  %v426_v57 = vpop.f32.mrb[1].mxu1  ;;  %v388_v54 = vld [vmem:[#allocation3 + $0xf0] sm:$0xff] }
 0x202   :  { %v489_v59 = vadd.f32 %v426_v57, %v374_v53  ;;  %v2100_v61 = vpop.f32.mrb[2].mxu1 }
 0x203   :  { %v492_v62 = vadd.f32 %v2100_v61, %v377_v55  ;;  %v429_v0 = vpop.f32.mrb[3].mxu1  ;;  %v507_v3 = vmul.f32 0.5, %v491_v56  ;;  %v386_v56 = vld [vmem:[#allocation3 + $0xe0] sm:$0xff] }
 0x204   :  { %v490_v4 = vadd.f32 %v429_v0, %v375_v58  ;;  %v505_v5 = vmul.f32 0.5, %v489_v59 }
 0x205   :  { %v508_v10 = vmul.f32 0.5, %v492_v62  ;;  %2288 = vtanh.f32 %v507_v3  ;;  %v389_v62 = vld [vmem:[#allocation3 + $0xf8] sm:$0xff] }
 0x206   :  { %v506_v13 = vmul.f32 0.5, %v490_v4  ;;  %2290 = vtanh.f32 %v505_v5 }
 0x207   :  { %2292 = vtanh.f32 %v508_v10 }
 0x208   :  { %v2103_v19 = vpop.f32.mrb[4].mxu1  ;;  %2294 = vtanh.f32 %v506_v13 }
 0x209   :  { %v495_v21 = vadd.f32 %v2103_v19, %v380_v6  ;;  %v442_v22 = vpop.f32.mrb[5].mxu1 }
 0x20a   :  { %v493_v24 = vadd.f32 %v442_v22, %v378_v12  ;;  %v2104_v25 = vpop.f32.mrb[6].mxu1  ;;  %v387_v12 = vld [vmem:[#allocation3 + $0xe8] sm:$0xff] }
 0x20b   :  { %v523_v27 = vmul.f32 0.5, %v495_v21  ;;  %v496_v28 = vadd.f32 %v2104_v25, %v381_v20  ;;  %v445_v29 = vpop.f32.mrb[7].mxu1 }
 0x20c   :  { %v521_v31 = vmul.f32 0.5, %v493_v24  ;;  %v494_v32 = vadd.f32 %v445_v29, %v379_v23 }
 0x20d   :  { %2296 = vtanh.f32 %v523_v27  ;;  %v524_v33 = vmul.f32 0.5, %v496_v28 }
 0x20e   :  { %2298 = vtanh.f32 %v521_v31  ;;  %v522_v34 = vmul.f32 0.5, %v494_v32 }
 0x20f   :  { %2300 = vtanh.f32 %v524_v33  ;;  %v2289_v43 = vpop.eup %2288 }
 0x210   :  { %2302 = vtanh.f32 %v522_v34  ;;  %v2107_v37 = vpop.f32.mrb[8].mxu1  ;;  %v2291_v48 = vpop.eup %2290  ;;  %v515_v52 = vmul.f32 0.5, %v2289_v43 }
 0x211   :  { %v499_v40 = vadd.f32 %v2107_v37, %v384_v35  ;;  %v458_v41 = vpop.f32.mrb[9].mxu1  ;;  %v2293_v51 = vpop.eup %2292  ;;  %v513_v58 = vmul.f32 0.5, %v2291_v48 }
 0x212   :  { %v497_v44 = vadd.f32 %v458_v41, %v382_v36  ;;  %v2108_v45 = vpop.f32.mrb[10].mxu1  ;;  %v2295_v53 = vpop.eup %2294  ;;  %v519_v3 = vadd.f32 0.5, %v515_v52  ;;  %v516_v4 = vmul.f32 0.5, %v2293_v51 }
 0x213   :  { %2304 = vtanh.f32 %v499_v40  ;;  %v500_v46 = vadd.f32 %v2108_v45, %v385_v39  ;;  %v461_v47 = vpop.f32.mrb[11].mxu1  ;;  %v514_v19 = vmul.f32 0.5, %v2295_v53  ;;  %v517_v31 = vadd.f32 0.5, %v513_v58 }
 0x214   :  { %2306 = vtanh.f32 %v497_v44  ;;  %v498_v50 = vadd.f32 %v461_v47, %v383_v42  ;;  %v520_v36 = vadd.f32 0.5, %v516_v4 }
 0x215   :  { %2308 = vtanh.f32 %v500_v46  ;;  %v518_v45 = vadd.f32 0.5, %v514_v19 }
 0x216   :  { %2310 = vtanh.f32 %v498_v50 }
 0x217   :  { %v2297_v55 = vpop.eup %2296 }
 0x218   :  { %v2299_v57 = vpop.eup %2298  ;;  %v531_v59 = vmul.f32 0.5, %v2297_v55  ;;  %v2111_v61 = vpop.f32.mrb[12].mxu1 }
 0x219   :  { %v2301_v0 = vpop.eup %2300  ;;  %v529_v5 = vmul.f32 0.5, %v2299_v57  ;;  %v503_v6 = vadd.f32 %v2111_v61, %v388_v54  ;;  %v474_v10 = vpop.f32.mrb[13].mxu1 }
 0x21a   :  { %v2303_v13 = vpop.eup %2302  ;;  %v535_v20 = vadd.f32 0.5, %v531_v59  ;;  %v532_v21 = vmul.f32 0.5, %v2301_v0  ;;  %v501_v22 = vadd.f32 %v474_v10, %v386_v56  ;;  %v2112_v23 = vpop.f32.mrb[14].mxu1 }
 0x21b   :  { %v533_v24 = vadd.f32 0.5, %v529_v5  ;;  %v530_v25 = vmul.f32 0.5, %v2303_v13  ;;  %v543_v27 = vmul.f32 0.5, %v503_v6  ;;  %v504_v28 = vadd.f32 %v2112_v23, %v389_v62  ;;  %v477_v29 = vpop.f32.mrb[15].mxu1 }
 0x21c   :  { %v536_v32 = vadd.f32 0.5, %v532_v21  ;;  %v541_v33 = vmul.f32 0.5, %v501_v22  ;;  %v502_v34 = vadd.f32 %v477_v29, %v387_v12  ;;  %v559_v41 = vmul.f32 %v535_v20, %v2779_v60 }
 0x21d   :  { %v2305_v35 = vpop.eup %2304  ;;  %v534_v37 = vadd.f32 0.5, %v530_v25  ;;  %2312 = vtanh.f32 %v543_v27  ;;  %v544_v39 = vmul.f32 0.5, %v504_v28  ;;  %v557_v46 = vmul.f32 %v533_v24, %v2781_v63 }
 0x21e   :  { %v2307_v40 = vpop.eup %2306  ;;  %v563_v42 = vmul.f32 %v2305_v35, %v519_v3  ;;  %2314 = vtanh.f32 %v541_v33  ;;  %v542_v43 = vmul.f32 0.5, %v502_v34  ;;  %v560_v50 = vmul.f32 %v536_v32, %v2784_v1 }
 0x21f   :  { %v2309_v44 = vpop.eup %2308  ;;  %v561_v47 = vmul.f32 %v2307_v40, %v517_v31  ;;  %2316 = vtanh.f32 %v544_v39  ;;  %v558_v53 = vmul.f32 %v534_v37, %v2786_v2 }
 0x220   :  { %v2311_v48 = vpop.eup %2310  ;;  %v2828_v51 = vadd.f32 %v563_v42, %v559_v41  ;;  %v564_v52 = vmul.f32 %v2309_v44, %v520_v36  ;;  %2318 = vtanh.f32 %v542_v43  ;;  %v596_v42 = vld [vmem:[#allocation3 + $0x118] sm:$0xff]  ;;  %v594_v44 = vld [vmem:[#allocation3 + $0x108] sm:$0xff] }
 0x221   :  { %v2831_v54 = vadd.f32 %v561_v47, %v557_v46  ;;  %v562_v60 = vmul.f32 %v2311_v48, %v518_v45 }
 0x222   :  { %2320 = vtanh.f32 %v2828_v51  ;;  %v2834_v55 = vadd.f32 %v564_v52, %v560_v50  ;;  %v599_v52 = vld [vmem:[#allocation3 + $0x130] sm:$0xff] }
 0x223   :  { %2322 = vtanh.f32 %v2831_v54  ;;  %v2837_v63 = vadd.f32 %v562_v60, %v558_v53 }
 0x224   :  { %2324 = vtanh.f32 %v2834_v55 }
 0x225   :  { %2326 = vtanh.f32 %v2837_v63 }
 0x227   :  { %v2313_v1 = vpop.eup %2312 }
 0x228   :  { %v2315_v56 = vpop.eup %2314  ;;  %v551_v57 = vmul.f32 0.5, %v2313_v1  ;;  %v600_v1 = vld [vmem:[#allocation3 + $0x138] sm:$0xff] }
 0x229   :  { %v2317_v58 = vpop.eup %2316  ;;  %v549_v2 = vmul.f32 0.5, %v2315_v56 }
 0x22a   :  { %v2319_v59 = vpop.eup %2318  ;;  %v552_v61 = vmul.f32 0.5, %v2317_v58  ;;  %v555_v62 = vadd.f32 0.5, %v551_v57  ;;  %v598_v58 = vld [vmem:[#allocation3 + $0x128] sm:$0xff] }
 0x22b   :  { %v553_v0 = vadd.f32 0.5, %v549_v2  ;;  %v550_v3 = vmul.f32 0.5, %v2319_v59 }
 0x22c   :  { %v2321_v4 = vpop.eup %2320  ;;  %v556_v5 = vadd.f32 0.5, %v552_v61 }
 0x22d   :  { %v2323_v6 = vpop.eup %2322  ;;  %v554_v10 = vadd.f32 0.5, %v550_v3  ;;  %v575_v20 = vmul.f32 %v2321_v4, %v555_v62 }
 0x22e   :  { %v2325_v12 = vpop.eup %2324  ;;  %v573_v13 = vmul.f32 %v2323_v6, %v553_v0 }
 0x22f   :  { %v2327_v19 = vpop.eup %2326  ;;  %v576_v21 = vmul.f32 %v2325_v12, %v556_v5  ;;  %v579_v29 = vmul.f32 %v575_v20, %v2793_v26  ;;  %v601_v12 = vld [vmem:[#allocation3 + $0x140] sm:$0xff] }
 0x230   :  { %v574_v22 = vmul.f32 %v2327_v19, %v554_v10  ;;  %v577_v24 = vmul.f32 %v573_v13, %v2791_v11  ;;  %v603_v10 = vld [vmem:[#allocation3 + $0x150] sm:$0xff]  ;;  %v604_v19 = vld [vmem:[#allocation3 + $0x158] sm:$0xff] }
 0x231   :  { %v610_v23 = vpack.c.bf16 %v576_v21, %v575_v20  ;;  %v580_v31 = vmul.f32 %v576_v21, %v2799_v38 }
 0x232   :  { %v578_v25 = vmul.f32 %v574_v22, %v2795_v30  ;;  %v609_v27 = vpack.c.bf16 %v574_v22, %v573_v13  ;;  %v602_v22 = vld [vmem:[#allocation3 + $0x148] sm:$0xff] }
 0x234   :  { %v581_v28 = vadd.f32 %v578_v25, %v577_v24  ;;  %2113 = vmatprep.subr.bf16.mxu0 %v609_v27 }
 0x235   :  { %2114 = vmatpush3.bf16.msra.mxu0 %v609_v27 }
 0x236   :  { %v582_v32 = vadd.f32 %v581_v28, %v579_v29  ;;  %2115 = vmatprep.subr.bf16.mxu0 %v610_v23 }
 0x238   :  { %v583_v33 = vadd.f32 %v582_v32, %v580_v31 }
 0x239   :  { %2116 = vmatpush3.bf16.msra.mxu0 %v610_v23 }
 0x23a   :  { %v584_v34 = vrot.slane %v583_v33, 4 }
 0x23c   :  { %v585_v35 = vadd.f32 %v584_v34, %v583_v33  ;;  %2118 = vmatmul.mubr.msk.bf16.vlgmr.msra.gmra.mrb[16].mxu0 %vm127_vm0, %v2707_v8  ;;  %v595_v8 = vld [vmem:[#allocation3 + $0x110] sm:$0xff] }
 0x23d   :  { %2121 = vmatprep.mubr.msk.bf16.mxu0 %vm127_vm0, %v2712_v9  ;;  %v593_v9 = vld [vmem:[#allocation3 + $0x100] sm:$0xff] }
 0x23e   :  { %v586_v36 = vrot.slane %v585_v35, 2 }
 0x240   :  { %v587_v37 = vadd.f32 %v586_v36, %v585_v35  ;;  %v607_v35 = vld [vmem:[#allocation3 + $0x170] sm:$0xff] }
 0x242   :  { %v588_v39 = vrot.slane %v587_v37, 1 }
 0x244   :  { %v589_v40 = vadd.f32 %v588_v39, %v587_v37  ;;  %2122 = vmatmul.mubr.msk.bf16.gmra.mrb[20].mxu0 %vm127_vm0, %v2733_v14  ;;  %v605_v37 = vld [vmem:[#allocation3 + $0x160] sm:$0xff] }
 0x245   :  { %2125 = vmatprep.mubr.msk.bf16.mxu0 %vm127_vm0, %v2738_v15 }
 0x246   :  { %v590_v41 = vadd.f32 %v589_v40, %v2810_v49 }
 0x248   :  { %591 = vst [vmem:[#allocation6 + $0x1] sm:$0x1] %v590_v41 }
 0x24c   :  { %2126 = vmatmul.mubr.msk.bf16.gmra.mrb[24].mxu0 %vm127_vm0, %v2747_v16 }
 0x24d   :  { %2129 = vmatprep.mubr.msk.bf16.mxu0 %vm127_vm0, %v2752_v17 }
 0x254   :  { %2130 = vmatmul.mubr.msk.bf16.gmra.mrb[28].mxu0 %vm127_vm0, %v2761_v18  ;;  %v597_v18 = vld [vmem:[#allocation3 + $0x120] sm:$0xff] }
 0x255   :  { %2157 = vmatprep.mubr.msk.bf16.mxu0 %vm127_vm0, %v2698_v7 }
 0x30f   :  { %v2119_v14 = vpop.f32.mrb[16].mxu0 }
 0x310   :  { %v710_v15 = vadd.f32 %v2119_v14, %v595_v8  ;;  %v645_v43 = vpop.f32.mrb[17].mxu0 }
 0x311   :  { %v708_v45 = vadd.f32 %v645_v43, %v593_v9  ;;  %v2120_v46 = vpop.f32.mrb[18].mxu0  ;;  %v608_v9 = vld [vmem:[#allocation3 + $0x178] sm:$0xff] }
 0x312   :  { %v711_v47 = vadd.f32 %v2120_v46, %v596_v42  ;;  %v648_v16 = vpop.f32.mrb[19].mxu0  ;;  %v726_v48 = vmul.f32 0.5, %v710_v15  ;;  %v606_v46 = vld [vmem:[#allocation3 + $0x168] sm:$0xff] }
 0x313   :  { %v709_v50 = vadd.f32 %v648_v16, %v594_v44  ;;  %v724_v17 = vmul.f32 0.5, %v708_v45 }
 0x314   :  { %v727_v53 = vmul.f32 0.5, %v711_v47  ;;  %2328 = vtanh.f32 %v726_v48 }
 0x315   :  { %v725_v60 = vmul.f32 0.5, %v709_v50  ;;  %2330 = vtanh.f32 %v724_v17 }
 0x316   :  { %2332 = vtanh.f32 %v727_v53 }
 0x317   :  { %v2123_v7 = vpop.f32.mrb[20].mxu0  ;;  %2334 = vtanh.f32 %v725_v60 }
 0x318   :  { %v714_v56 = vadd.f32 %v2123_v7, %v599_v52  ;;  %v661_v57 = vpop.f32.mrb[21].mxu0 }
 0x319   :  { %v712_v2 = vadd.f32 %v661_v57, %v597_v18  ;;  %v2124_v59 = vpop.f32.mrb[22].mxu0 }
 0x31a   :  { %v742_v61 = vmul.f32 0.5, %v714_v56  ;;  %v715_v62 = vadd.f32 %v2124_v59, %v600_v1  ;;  %v664_v0 = vpop.f32.mrb[23].mxu0 }
 0x31b   :  { %v740_v3 = vmul.f32 0.5, %v712_v2  ;;  %v713_v4 = vadd.f32 %v664_v0, %v598_v58 }
 0x31c   :  { %2336 = vtanh.f32 %v742_v61  ;;  %v743_v5 = vmul.f32 0.5, %v715_v62 }
 0x31d   :  { %2338 = vtanh.f32 %v740_v3  ;;  %v741_v6 = vmul.f32 0.5, %v713_v4 }
 0x31e   :  { %2340 = vtanh.f32 %v743_v5  ;;  %v2329_v23 = vpop.eup %2328 }
 0x31f   :  { %2342 = vtanh.f32 %v741_v6  ;;  %v2127_v13 = vpop.f32.mrb[24].mxu0  ;;  %v2331_v29 = vpop.eup %2330  ;;  %v734_v33 = vmul.f32 0.5, %v2329_v23 }
 0x320   :  { %v718_v20 = vadd.f32 %v2127_v13, %v603_v10  ;;  %v677_v21 = vpop.f32.mrb[25].mxu0  ;;  %v2333_v32 = vpop.eup %2332  ;;  %v732_v40 = vmul.f32 0.5, %v2331_v29 }
 0x321   :  { %v716_v24 = vadd.f32 %v677_v21, %v601_v12  ;;  %v2128_v25 = vpop.f32.mrb[26].mxu0  ;;  %v2335_v34 = vpop.eup %2334  ;;  %v738_v42 = vadd.f32 0.5, %v734_v33  ;;  %v735_v15 = vmul.f32 0.5, %v2333_v32 }
 0x322   :  { %2344 = vtanh.f32 %v718_v20  ;;  %v719_v27 = vadd.f32 %v2128_v25, %v604_v19  ;;  %v680_v28 = vpop.f32.mrb[27].mxu0  ;;  %v733_v16 = vmul.f32 0.5, %v2335_v34  ;;  %v736_v56 = vadd.f32 0.5, %v732_v40 }
 0x323   :  { %2346 = vtanh.f32 %v716_v24  ;;  %v717_v31 = vadd.f32 %v680_v28, %v602_v22  ;;  %v739_v61 = vadd.f32 0.5, %v735_v15 }
 0x324   :  { %2348 = vtanh.f32 %v719_v27  ;;  %v737_v12 = vadd.f32 0.5, %v733_v16 }
 0x325   :  { %2350 = vtanh.f32 %v717_v31 }
 0x326   :  { %v2337_v36 = vpop.eup %2336 }
 0x327   :  { %v2339_v39 = vpop.eup %2338  ;;  %v750_v41 = vmul.f32 0.5, %v2337_v36  ;;  %v2131_v8 = vpop.f32.mrb[28].mxu0 }
 0x328   :  { %v2341_v14 = vpop.eup %2340  ;;  %v748_v43 = vmul.f32 0.5, %v2339_v39  ;;  %v722_v44 = vadd.f32 %v2131_v8, %v607_v35  ;;  %v693_v45 = vpop.f32.mrb[29].mxu0 }
 0x329   :  { %v2343_v47 = vpop.eup %2342  ;;  %v754_v48 = vadd.f32 0.5, %v750_v41  ;;  %v751_v50 = vmul.f32 0.5, %v2341_v14  ;;  %v720_v17 = vadd.f32 %v693_v45, %v605_v37  ;;  %v2132_v52 = vpop.f32.mrb[30].mxu0 }
 0x32a   :  { %v752_v53 = vadd.f32 0.5, %v748_v43  ;;  %v749_v18 = vmul.f32 0.5, %v2343_v47  ;;  %v762_v60 = vmul.f32 0.5, %v722_v44  ;;  %v723_v7 = vadd.f32 %v2132_v52, %v608_v9  ;;  %v696_v1 = vpop.f32.mrb[31].mxu0 }
 0x32b   :  { %v755_v57 = vadd.f32 0.5, %v751_v50  ;;  %v760_v58 = vmul.f32 0.5, %v720_v17  ;;  %v721_v2 = vadd.f32 %v696_v1, %v606_v46  ;;  %v778_v4 = vmul.f32 %v754_v48, %v2828_v51 }
 0x32c   :  { %v2345_v59 = vpop.eup %2344  ;;  %v753_v62 = vadd.f32 0.5, %v749_v18  ;;  %2352 = vtanh.f32 %v762_v60  ;;  %v763_v0 = vmul.f32 0.5, %v723_v7  ;;  %v776_v13 = vmul.f32 %v752_v53, %v2831_v54  ;;  %v2885_v60 = vld [vmem:[%s3119_s1 + $0x8] sm:$0xff]   ;;  %v2892_v7 = vld [vmem:[%s3119_s1 + $0x10] sm:$0xff]  }
 0x32d   :  { %v2347_v3 = vpop.eup %2346  ;;  %v782_v5 = vmul.f32 %v2345_v59, %v738_v42  ;;  %2354 = vtanh.f32 %v760_v58  ;;  %v761_v6 = vmul.f32 0.5, %v721_v2  ;;  %v779_v21 = vmul.f32 %v755_v57, %v2834_v55  ;;  %v2899_v2 = vld [vmem:[%s3119_s1 + $0x18] sm:$0xff]   ;;  %v2906_v59 = vld [vmem:[%s3119_s1 + $0x20] sm:$0xff]  }
 0x32e   :  { %v2349_v10 = vpop.eup %2348  ;;  %v780_v19 = vmul.f32 %v2347_v3, %v736_v56  ;;  %2356 = vtanh.f32 %v763_v0  ;;  %v777_v24 = vmul.f32 %v753_v62, %v2837_v63  ;;  %v2914_v62 = vld [vmem:[%s3119_s1 + $0x28] sm:$0xff]   ;;  %v2921_v0 = vld [vmem:[%s3119_s1 + $0x30] sm:$0xff]   ;;  %v2928_v3 = vld [vmem:[%s3119_s1 + $0x38] sm:$0xff]  }
 0x32f   :  { %v2351_v20 = vpop.eup %2350  ;;  %v2865_v22 = vadd.f32 %v782_v5, %v778_v4  ;;  %v783_v23 = vmul.f32 %v2349_v10, %v739_v61  ;;  %2358 = vtanh.f32 %v761_v6  ;;  %v2935_v4 = vld [vmem:[%s3119_s1] sm:$0xff]   ;;  %v814_v5 = vld [vmem:[#allocation3 + $0x190] sm:$0xff] }
 0x330   :  { %v2868_v25 = vadd.f32 %v780_v19, %v776_v13  ;;  %v781_v51 = vmul.f32 %v2351_v20, %v737_v12  ;;  %v812_v6 = vld [vmem:[#allocation3 + $0x180] sm:$0xff]  ;;  %v815_v12 = vld [vmem:[#allocation3 + $0x198] sm:$0xff]  ;;  %v813_v20 = vld [vmem:[#allocation3 + $0x188] sm:$0xff] }
 0x331   :  { %2360 = vtanh.f32 %v2865_v22  ;;  %v2871_v27 = vadd.f32 %v783_v23, %v779_v21 }
 0x332   :  { %2362 = vtanh.f32 %v2868_v25  ;;  %v2874_v54 = vadd.f32 %v781_v51, %v777_v24 }
 0x333   :  { %2364 = vtanh.f32 %v2871_v27 }
 0x334   :  { %2366 = vtanh.f32 %v2874_v54 }
 0x336   :  { %v2353_v55 = vpop.eup %2352 }
 0x337   :  { %v2355_v28 = vpop.eup %2354  ;;  %v770_v29 = vmul.f32 0.5, %v2353_v55 }
 0x338   :  { %v2357_v31 = vpop.eup %2356  ;;  %v768_v63 = vmul.f32 0.5, %v2355_v28 }
 0x339   :  { %v2359_v32 = vpop.eup %2358  ;;  %v771_v33 = vmul.f32 0.5, %v2357_v31  ;;  %v774_v34 = vadd.f32 0.5, %v770_v29  ;;  %v818_v31 = vld [vmem:[#allocation3 + $0x1b0] sm:$0xff] }
 0x33a   :  { %v772_v35 = vadd.f32 0.5, %v768_v63  ;;  %v769_v36 = vmul.f32 0.5, %v2359_v32  ;;  %v816_v32 = vld [vmem:[#allocation3 + $0x1a0] sm:$0xff] }
 0x33b   :  { %v2361_v37 = vpop.eup %2360  ;;  %v775_v39 = vadd.f32 0.5, %v771_v33 }
 0x33c   :  { %v2363_v40 = vpop.eup %2362  ;;  %v773_v41 = vadd.f32 0.5, %v769_v36  ;;  %v794_v42 = vmul.f32 %v2361_v37, %v774_v34 }
 0x33d   :  { %v2365_v8 = vpop.eup %2364  ;;  %v792_v9 = vmul.f32 %v2363_v40, %v772_v35  ;;  %v819_v35 = vld [vmem:[#allocation3 + $0x1b8] sm:$0xff] }
 0x33e   :  { %v2367_v14 = vpop.eup %2366  ;;  %v795_v15 = vmul.f32 %v2365_v8, %v775_v39  ;;  %v798_v48 = vmul.f32 %v794_v42, %v2793_v26  ;;  %v817_v39 = vld [vmem:[#allocation3 + $0x1a8] sm:$0xff] }
 0x33f   :  { %v793_v43 = vmul.f32 %v2367_v14, %v773_v41  ;;  %v796_v45 = vmul.f32 %v792_v9, %v2791_v11 }
 0x340   :  { %v829_v44 = vpack.c.bf16 %v795_v15, %v794_v42  ;;  %v799_v50 = vmul.f32 %v795_v15, %v2799_v38 }
 0x341   :  { %v797_v46 = vmul.f32 %v793_v43, %v2795_v30  ;;  %v828_v47 = vpack.c.bf16 %v793_v43, %v792_v9 }
 0x343   :  { %v800_v16 = vadd.f32 %v797_v46, %v796_v45  ;;  %2133 = vmatprep.subr.bf16.mxu1 %v828_v47  ;;  %v822_v45 = vld [vmem:[#allocation3 + $0x1d0] sm:$0xff]  ;;  %v820_v46 = vld [vmem:[#allocation3 + $0x1c0] sm:$0xff] }
 0x344   :  { %2134 = vmatpush3.bf16.msra.mxu1 %v828_v47 }
 0x345   :  { %v801_v17 = vadd.f32 %v800_v16, %v798_v48  ;;  %2135 = vmatprep.subr.bf16.mxu1 %v829_v44  ;;  %v823_v16 = vld [vmem:[#allocation3 + $0x1d8] sm:$0xff] }
 0x347   :  { %v802_v52 = vadd.f32 %v801_v17, %v799_v50  ;;  %v821_v17 = vld [vmem:[#allocation3 + $0x1c8] sm:$0xff] }
 0x348   :  { %2136 = vmatpush3.bf16.msra.mxu1 %v829_v44 }
 0x349   :  { %v803_v53 = vrot.slane %v802_v52, 4 }
 0x34b   :  { %v804_v18 = vadd.f32 %v803_v53, %v802_v52  ;;  %2138 = vmatmul.mubr.msk.bf16.vlgmr.msra.gmra.mrb[16].mxu1 %vm127_vm0, %v2885_v60 }
 0x34c   :  { %2141 = vmatprep.mubr.msk.bf16.mxu1 %vm127_vm0, %v2892_v7 }
 0x34d   :  { %v805_v1 = vrot.slane %v804_v18, 2 }
 0x34f   :  { %v806_v56 = vadd.f32 %v805_v1, %v804_v18 }
 0x351   :  { %v807_v57 = vrot.slane %v806_v56, 1 }
 0x353   :  { %v808_v58 = vadd.f32 %v807_v57, %v806_v56  ;;  %2142 = vmatmul.mubr.msk.bf16.gmra.mrb[20].mxu1 %vm127_vm0, %v2899_v2 }
 0x354   :  { %2145 = vmatprep.mubr.msk.bf16.mxu1 %vm127_vm0, %v2906_v59 }
 0x355   :  { %v809_v61 = vadd.f32 %v808_v58, %v2810_v49 }
 0x357   :  { %810 = vst [vmem:[#allocation6 + $0x2] sm:$0x1] %v809_v61 }
 0x35b   :  { %2146 = vmatmul.mubr.msk.bf16.gmra.mrb[24].mxu1 %vm127_vm0, %v2914_v62 }
 0x35c   :  { %2149 = vmatprep.mubr.msk.bf16.mxu1 %vm127_vm0, %v2921_v0 }
 0x363   :  { %2150 = vmatmul.mubr.msk.bf16.gmra.mrb[28].mxu1 %vm127_vm0, %v2928_v3 }
 0x364   :  { %2177 = vmatprep.mubr.msk.bf16.mxu1 %vm127_vm0, %v2935_v4 }
 0x41e   :  { %v2139_v10 = vpop.f32.mrb[16].mxu1 }
 0x41f   :  { %v929_v13 = vadd.f32 %v2139_v10, %v814_v5  ;;  %v864_v19 = vpop.f32.mrb[17].mxu1  ;;  %v826_v10 = vld [vmem:[#allocation3 + $0x1f0] sm:$0xff] }
 0x420   :  { %v927_v21 = vadd.f32 %v864_v19, %v812_v6  ;;  %v2140_v23 = vpop.f32.mrb[18].mxu1 }
 0x421   :  { %v930_v24 = vadd.f32 %v2140_v23, %v815_v12  ;;  %v867_v51 = vpop.f32.mrb[19].mxu1  ;;  %v945_v55 = vmul.f32 0.5, %v929_v13  ;;  %v824_v13 = vld [vmem:[#allocation3 + $0x1e0] sm:$0xff] }
 0x422   :  { %v928_v28 = vadd.f32 %v867_v51, %v813_v20  ;;  %v943_v29 = vmul.f32 0.5, %v927_v21 }
 0x423   :  { %v946_v63 = vmul.f32 0.5, %v930_v24  ;;  %2368 = vtanh.f32 %v945_v55  ;;  %v827_v24 = vld [vmem:[#allocation3 + $0x1f8] sm:$0xff] }
 0x424   :  { %v944_v33 = vmul.f32 0.5, %v928_v28  ;;  %2370 = vtanh.f32 %v943_v29 }
 0x425   :  { %2372 = vtanh.f32 %v946_v63 }
 0x426   :  { %v2143_v34 = vpop.f32.mrb[20].mxu1  ;;  %2374 = vtanh.f32 %v944_v33 }
 0x427   :  { %v933_v36 = vadd.f32 %v2143_v34, %v818_v31  ;;  %v880_v37 = vpop.f32.mrb[21].mxu1 }
 0x428   :  { %v931_v40 = vadd.f32 %v880_v37, %v816_v32  ;;  %v2144_v41 = vpop.f32.mrb[22].mxu1  ;;  %v825_v32 = vld [vmem:[#allocation3 + $0x1e8] sm:$0xff] }
 0x429   :  { %v961_v8 = vmul.f32 0.5, %v933_v36  ;;  %v934_v9 = vadd.f32 %v2144_v41, %v819_v35  ;;  %v883_v14 = vpop.f32.mrb[23].mxu1 }
 0x42a   :  { %v959_v42 = vmul.f32 0.5, %v931_v40  ;;  %v932_v15 = vadd.f32 %v883_v14, %v817_v39 }
 0x42b   :  { %2376 = vtanh.f32 %v961_v8  ;;  %v962_v43 = vmul.f32 0.5, %v934_v9 }
 0x42c   :  { %2378 = vtanh.f32 %v959_v42  ;;  %v960_v44 = vmul.f32 0.5, %v932_v15 }
 0x42d   :  { %2380 = vtanh.f32 %v962_v43  ;;  %v2369_v52 = vpop.eup %2368 }
 0x42e   :  { %2382 = vtanh.f32 %v960_v44  ;;  %v2147_v47 = vpop.f32.mrb[24].mxu1  ;;  %v2371_v57 = vpop.eup %2370  ;;  %v953_v5 = vmul.f32 0.5, %v2369_v52 }
 0x42f   :  { %v937_v48 = vadd.f32 %v2147_v47, %v822_v45  ;;  %v896_v50 = vpop.f32.mrb[25].mxu1  ;;  %v2373_v61 = vpop.eup %2372  ;;  %v951_v20 = vmul.f32 0.5, %v2371_v57 }
 0x430   :  { %v935_v53 = vadd.f32 %v896_v50, %v820_v46  ;;  %v2148_v18 = vpop.f32.mrb[26].mxu1  ;;  %v2375_v6 = vpop.eup %2374  ;;  %v957_v55 = vadd.f32 0.5, %v953_v5  ;;  %v954_v28 = vmul.f32 0.5, %v2373_v61 }
 0x431   :  { %2384 = vtanh.f32 %v937_v48  ;;  %v938_v1 = vadd.f32 %v2148_v18, %v823_v16  ;;  %v899_v56 = vpop.f32.mrb[27].mxu1  ;;  %v952_v34 = vmul.f32 0.5, %v2375_v6  ;;  %v955_v42 = vadd.f32 0.5, %v951_v20 }
 0x432   :  { %2386 = vtanh.f32 %v935_v53  ;;  %v936_v58 = vadd.f32 %v899_v56, %v821_v17  ;;  %v958_v46 = vadd.f32 0.5, %v954_v28 }
 0x433   :  { %2388 = vtanh.f32 %v938_v1  ;;  %v956_v18 = vadd.f32 0.5, %v952_v34 }
 0x434   :  { %2390 = vtanh.f32 %v936_v58 }
 0x435   :  { %v2377_v12 = vpop.eup %2376 }
 0x436   :  { %v2379_v19 = vpop.eup %2378  ;;  %v969_v21 = vmul.f32 0.5, %v2377_v12  ;;  %v2151_v23 = vpop.f32.mrb[28].mxu1 }
 0x437   :  { %v2381_v51 = vpop.eup %2380  ;;  %v967_v29 = vmul.f32 0.5, %v2379_v19  ;;  %v941_v31 = vadd.f32 %v2151_v23, %v826_v10  ;;  %v912_v63 = vpop.f32.mrb[29].mxu1 }
 0x438   :  { %v2383_v33 = vpop.eup %2382  ;;  %v973_v35 = vadd.f32 0.5, %v969_v21  ;;  %v970_v36 = vmul.f32 0.5, %v2381_v51  ;;  %v939_v37 = vadd.f32 %v912_v63, %v824_v13  ;;  %v2152_v39 = vpop.f32.mrb[30].mxu1 }
 0x439   :  { %v971_v40 = vadd.f32 0.5, %v967_v29  ;;  %v968_v41 = vmul.f32 0.5, %v2383_v33  ;;  %v981_v8 = vmul.f32 0.5, %v941_v31  ;;  %v942_v9 = vadd.f32 %v2152_v39, %v827_v24  ;;  %v915_v14 = vpop.f32.mrb[31].mxu1 }
 0x43a   :  { %v974_v15 = vadd.f32 0.5, %v970_v36  ;;  %v979_v43 = vmul.f32 0.5, %v939_v37  ;;  %v940_v44 = vadd.f32 %v915_v14, %v825_v32  ;;  %v997_v50 = vmul.f32 %v973_v35, %v2865_v22 }
 0x43b   :  { %v2385_v45 = vpop.eup %2384  ;;  %v972_v47 = vadd.f32 0.5, %v968_v41  ;;  %2392 = vtanh.f32 %v981_v8  ;;  %v982_v16 = vmul.f32 0.5, %v942_v9  ;;  %v995_v1 = vmul.f32 %v971_v40, %v2868_v25 }
 0x43c   :  { %v2387_v48 = vpop.eup %2386  ;;  %v1001_v17 = vmul.f32 %v2385_v45, %v957_v55  ;;  %2394 = vtanh.f32 %v979_v43  ;;  %v980_v52 = vmul.f32 0.5, %v940_v44  ;;  %v998_v58 = vmul.f32 %v974_v15, %v2871_v27 }
 0x43d   :  { %v2389_v53 = vpop.eup %2388  ;;  %v999_v56 = vmul.f32 %v2387_v48, %v955_v42  ;;  %2396 = vtanh.f32 %v982_v16  ;;  %v996_v6 = vmul.f32 %v972_v47, %v2874_v54 }
 0x43e   :  { %v2391_v57 = vpop.eup %2390  ;;  %v2942_v61 = vadd.f32 %v1001_v17, %v997_v50  ;;  %v1002_v5 = vmul.f32 %v2389_v53, %v958_v46  ;;  %2398 = vtanh.f32 %v980_v52  ;;  %v1033_v17 = vld [vmem:[#allocation3 + $0x210] sm:$0xff]  ;;  %v1031_v52 = vld [vmem:[#allocation3 + $0x200] sm:$0xff] }
 0x43f   :  { %v2945_v10 = vadd.f32 %v999_v56, %v995_v1  ;;  %v1000_v22 = vmul.f32 %v2391_v57, %v956_v18  ;;  %v1034_v18 = vld [vmem:[#allocation3 + $0x218] sm:$0xff]  ;;  %v1032_v57 = vld [vmem:[#allocation3 + $0x208] sm:$0xff] }
 0x440   :  { %2400 = vtanh.f32 %v2942_v61  ;;  %v2948_v12 = vadd.f32 %v1002_v5, %v998_v58 }
 0x441   :  { %2402 = vtanh.f32 %v2945_v10  ;;  %v2951_v25 = vadd.f32 %v1000_v22, %v996_v6 }
 0x442   :  { %2404 = vtanh.f32 %v2948_v12 }
 0x443   :  { %2406 = vtanh.f32 %v2951_v25 }
 0x445   :  { %v2393_v27 = vpop.eup %2392 }
 0x446   :  { %v2395_v13 = vpop.eup %2394  ;;  %v989_v19 = vmul.f32 0.5, %v2393_v27 }
 0x447   :  { %v2397_v20 = vpop.eup %2396  ;;  %v987_v54 = vmul.f32 0.5, %v2395_v13 }
 0x448   :  { %v2399_v21 = vpop.eup %2398  ;;  %v990_v23 = vmul.f32 0.5, %v2397_v20  ;;  %v993_v24 = vadd.f32 0.5, %v989_v19  ;;  %v1037_v20 = vld [vmem:[#allocation3 + $0x230] sm:$0xff] }
 0x449   :  { %v991_v51 = vadd.f32 0.5, %v987_v54  ;;  %v988_v55 = vmul.f32 0.5, %v2399_v21  ;;  %v1035_v21 = vld [vmem:[#allocation3 + $0x220] sm:$0xff] }
 0x44a   :  { %v2401_v28 = vpop.eup %2400  ;;  %v994_v29 = vadd.f32 0.5, %v990_v23 }
 0x44b   :  { %v2403_v31 = vpop.eup %2402  ;;  %v992_v63 = vadd.f32 0.5, %v988_v55  ;;  %v1013_v35 = vmul.f32 %v2401_v28, %v993_v24 }
 0x44c   :  { %v2405_v32 = vpop.eup %2404  ;;  %v1011_v33 = vmul.f32 %v2403_v31, %v991_v51  ;;  %v1038_v51 = vld [vmem:[#allocation3 + $0x238] sm:$0xff] }
 0x44d   :  { %v2407_v34 = vpop.eup %2406  ;;  %v1014_v36 = vmul.f32 %v2405_v32, %v994_v29  ;;  %v1017_v14 = vmul.f32 %v1013_v35, %v2793_v26  ;;  %v1036_v29 = vld [vmem:[#allocation3 + $0x228] sm:$0xff] }
 0x44e   :  { %v1012_v37 = vmul.f32 %v2407_v34, %v992_v63  ;;  %v1015_v40 = vmul.f32 %v1011_v33, %v2791_v11 }
 0x44f   :  { %v1048_v39 = vpack.c.bf16 %v1014_v36, %v1013_v35  ;;  %v1018_v42 = vmul.f32 %v1014_v36, %v2799_v38 }
 0x450   :  { %v1016_v41 = vmul.f32 %v1012_v37, %v2795_v30  ;;  %v1047_v8 = vpack.c.bf16 %v1012_v37, %v1011_v33 }
 0x452   :  { %v1019_v9 = vadd.f32 %v1016_v41, %v1015_v40  ;;  %2153 = vmatprep.subr.bf16.mxu0 %v1047_v8  ;;  %v1041_v40 = vld [vmem:[#allocation3 + $0x250] sm:$0xff]  ;;  %v1039_v41 = vld [vmem:[#allocation3 + $0x240] sm:$0xff] }
 0x453   :  { %2154 = vmatpush3.bf16.msra.mxu0 %v1047_v8 }
 0x454   :  { %v1020_v15 = vadd.f32 %v1019_v9, %v1017_v14  ;;  %2155 = vmatprep.subr.bf16.mxu0 %v1048_v39  ;;  %v1042_v9 = vld [vmem:[#allocation3 + $0x258] sm:$0xff] }
 0x456   :  { %v1021_v43 = vadd.f32 %v1020_v15, %v1018_v42  ;;  %v1040_v15 = vld [vmem:[#allocation3 + $0x248] sm:$0xff] }
 0x457   :  { %2156 = vmatpush3.bf16.msra.mxu0 %v1048_v39 }
 0x458   :  { %v1022_v44 = vrot.slane %v1021_v43, 4 }
 0x45a   :  { %v1023_v45 = vadd.f32 %v1022_v44, %v1021_v43  ;;  %2158 = vmatmul.mubr.msk.bf16.vlgmr.msra.gmra.mrb[32].mxu0 %vm127_vm0, %v2885_v60 }
 0x45b   :  { %2161 = vmatprep.mubr.msk.bf16.mxu0 %vm127_vm0, %v2892_v7 }
 0x45c   :  { %v1024_v46 = vrot.slane %v1023_v45, 2 }
 0x45e   :  { %v1025_v47 = vadd.f32 %v1024_v46, %v1023_v45 }
 0x460   :  { %v1026_v16 = vrot.slane %v1025_v47, 1 }
 0x462   :  { %v1027_v48 = vadd.f32 %v1026_v16, %v1025_v47  ;;  %2162 = vmatmul.mubr.msk.bf16.gmra.mrb[36].mxu0 %vm127_vm0, %v2899_v2 }
 0x463   :  { %2165 = vmatprep.mubr.msk.bf16.mxu0 %vm127_vm0, %v2906_v59 }
 0x464   :  { %v1028_v50 = vadd.f32 %v1027_v48, %v2810_v49 }
 0x466   :  { %1029 = vst [vmem:[#allocation6 + $0x3] sm:$0x1] %v1028_v50 }
 0x46a   :  { %2166 = vmatmul.mubr.msk.bf16.gmra.mrb[40].mxu0 %vm127_vm0, %v2914_v62 }
 0x46b   :  { %2169 = vmatprep.mubr.msk.bf16.mxu0 %vm127_vm0, %v2921_v0 }
 0x472   :  { %2170 = vmatmul.mubr.msk.bf16.gmra.mrb[44].mxu0 %vm127_vm0, %v2928_v3 }
 0x473   :  { %2197 = vmatprep.mubr.msk.bf16.mxu0 %vm127_vm0, %v2935_v4 }
 0x52d   :  { %v2159_v53 = vpop.f32.mrb[32].mxu0 }
 0x52e   :  { %v1148_v1 = vadd.f32 %v2159_v53, %v1033_v17  ;;  %v1083_v56 = vpop.f32.mrb[33].mxu0  ;;  %v1045_v53 = vld [vmem:[#allocation3 + $0x270] sm:$0xff] }
 0x52f   :  { %v1146_v58 = vadd.f32 %v1083_v56, %v1031_v52  ;;  %v2160_v5 = vpop.f32.mrb[34].mxu0 }
 0x530   :  { %v1149_v6 = vadd.f32 %v2160_v5, %v1034_v18  ;;  %v1086_v22 = vpop.f32.mrb[35].mxu0  ;;  %v1164_v27 = vmul.f32 0.5, %v1148_v1  ;;  %v1043_v1 = vld [vmem:[#allocation3 + $0x260] sm:$0xff] }
 0x531   :  { %v1147_v13 = vadd.f32 %v1086_v22, %v1032_v57  ;;  %v1162_v19 = vmul.f32 0.5, %v1146_v58 }
 0x532   :  { %v1165_v54 = vmul.f32 0.5, %v1149_v6  ;;  %2408 = vtanh.f32 %v1164_v27  ;;  %v1046_v6 = vld [vmem:[#allocation3 + $0x278] sm:$0xff] }
 0x533   :  { %v1163_v23 = vmul.f32 0.5, %v1147_v13  ;;  %2410 = vtanh.f32 %v1162_v19 }
 0x534   :  { %2412 = vtanh.f32 %v1165_v54 }
 0x535   :  { %v2163_v24 = vpop.f32.mrb[36].mxu0  ;;  %2414 = vtanh.f32 %v1163_v23 }
 0x536   :  { %v1152_v55 = vadd.f32 %v2163_v24, %v1037_v20  ;;  %v1099_v28 = vpop.f32.mrb[37].mxu0 }
 0x537   :  { %v1150_v31 = vadd.f32 %v1099_v28, %v1035_v21  ;;  %v2164_v63 = vpop.f32.mrb[38].mxu0  ;;  %v1044_v21 = vld [vmem:[#allocation3 + $0x268] sm:$0xff] }
 0x538   :  { %v1180_v32 = vmul.f32 0.5, %v1152_v55  ;;  %v1153_v33 = vadd.f32 %v2164_v63, %v1038_v51  ;;  %v1102_v34 = vpop.f32.mrb[39].mxu0 }
 0x539   :  { %v1178_v35 = vmul.f32 0.5, %v1150_v31  ;;  %v1151_v36 = vadd.f32 %v1102_v34, %v1036_v29 }
 0x53a   :  { %2416 = vtanh.f32 %v1180_v32  ;;  %v1181_v37 = vmul.f32 0.5, %v1153_v33 }
 0x53b   :  { %2418 = vtanh.f32 %v1178_v35  ;;  %v1179_v39 = vmul.f32 0.5, %v1151_v36 }
 0x53c   :  { %2420 = vtanh.f32 %v1181_v37  ;;  %v2409_v43 = vpop.eup %2408 }
 0x53d   :  { %2422 = vtanh.f32 %v1179_v39  ;;  %v2167_v8 = vpop.f32.mrb[40].mxu0  ;;  %v2411_v16 = vpop.eup %2410  ;;  %v1172_v17 = vmul.f32 0.5, %v2409_v43 }
 0x53e   :  { %v1156_v14 = vadd.f32 %v2167_v8, %v1041_v40  ;;  %v1115_v42 = vpop.f32.mrb[41].mxu0  ;;  %v2413_v50 = vpop.eup %2412  ;;  %v1170_v57 = vmul.f32 0.5, %v2411_v16 }
 0x53f   :  { %v1154_v44 = vadd.f32 %v1115_v42, %v1039_v41  ;;  %v2168_v45 = vpop.f32.mrb[42].mxu0  ;;  %v2415_v52 = vpop.eup %2414  ;;  %v1176_v27 = vadd.f32 0.5, %v1172_v17  ;;  %v1173_v13 = vmul.f32 0.5, %v2413_v50 }
 0x540   :  { %2424 = vtanh.f32 %v1156_v14  ;;  %v1157_v46 = vadd.f32 %v2168_v45, %v1042_v9  ;;  %v1118_v47 = vpop.f32.mrb[43].mxu0  ;;  %v1171_v24 = vmul.f32 0.5, %v2415_v52  ;;  %v1174_v35 = vadd.f32 0.5, %v1170_v57 }
 0x541   :  { %2426 = vtanh.f32 %v1154_v44  ;;  %v1155_v48 = vadd.f32 %v1118_v47, %v1040_v15  ;;  %v1177_v41 = vadd.f32 0.5, %v1173_v13 }
 0x542   :  { %2428 = vtanh.f32 %v1157_v46  ;;  %v1175_v45 = vadd.f32 0.5, %v1171_v24 }
 0x543   :  { %2430 = vtanh.f32 %v1155_v48 }
 0x544   :  { %v2417_v18 = vpop.eup %2416 }
 0x545   :  { %v2419_v56 = vpop.eup %2418  ;;  %v1188_v58 = vmul.f32 0.5, %v2417_v18  ;;  %v2171_v5 = vpop.f32.mrb[44].mxu0 }
 0x546   :  { %v2421_v22 = vpop.eup %2420  ;;  %v1186_v19 = vmul.f32 0.5, %v2419_v56  ;;  %v1160_v20 = vadd.f32 %v2171_v5, %v1045_v53  ;;  %v1131_v54 = vpop.f32.mrb[45].mxu0 }
 0x547   :  { %v2423_v23 = vpop.eup %2422  ;;  %v1192_v51 = vadd.f32 0.5, %v1188_v58  ;;  %v1189_v55 = vmul.f32 0.5, %v2421_v22  ;;  %v1158_v28 = vadd.f32 %v1131_v54, %v1043_v1  ;;  %v2172_v29 = vpop.f32.mrb[46].mxu0 }
 0x548   :  { %v1190_v31 = vadd.f32 0.5, %v1186_v19  ;;  %v1187_v63 = vmul.f32 0.5, %v2423_v23  ;;  %v1200_v32 = vmul.f32 0.5, %v1160_v20  ;;  %v1161_v33 = vadd.f32 %v2172_v29, %v1046_v6  ;;  %v1134_v34 = vpop.f32.mrb[47].mxu0 }
 0x549   :  { %v1193_v36 = vadd.f32 0.5, %v1189_v55  ;;  %v1198_v37 = vmul.f32 0.5, %v1158_v28  ;;  %v1159_v39 = vadd.f32 %v1134_v34, %v1044_v21  ;;  %v1216_v42 = vmul.f32 %v1192_v51, %v2942_v61 }
 0x54a   :  { %v2425_v40 = vpop.eup %2424  ;;  %v1191_v8 = vadd.f32 0.5, %v1187_v63  ;;  %2432 = vtanh.f32 %v1200_v32  ;;  %v1201_v9 = vmul.f32 0.5, %v1161_v33  ;;  %v1214_v46 = vmul.f32 %v1190_v31, %v2945_v10 }
 0x54b   :  { %v2427_v14 = vpop.eup %2426  ;;  %v1220_v15 = vmul.f32 %v2425_v40, %v1176_v27  ;;  %2434 = vtanh.f32 %v1198_v37  ;;  %v1199_v43 = vmul.f32 0.5, %v1159_v39  ;;  %v1217_v48 = vmul.f32 %v1193_v36, %v2948_v12 }
 0x54c   :  { %v2429_v44 = vpop.eup %2428  ;;  %v1218_v47 = vmul.f32 %v2427_v14, %v1174_v35  ;;  %2436 = vtanh.f32 %v1201_v9  ;;  %v1215_v52 = vmul.f32 %v1191_v8, %v2951_v25 }
 0x54d   :  { %v2431_v16 = vpop.eup %2430  ;;  %v2979_v50 = vadd.f32 %v1220_v15, %v1216_v42  ;;  %v1221_v17 = vmul.f32 %v2429_v44, %v1177_v41  ;;  %2438 = vtanh.f32 %v1199_v43  ;;  %v1252_v15 = vld [vmem:[#allocation3 + $0x290] sm:$0xff]  ;;  %v1250_v43 = vld [vmem:[#allocation3 + $0x280] sm:$0xff] }
 0x54e   :  { %v2982_v53 = vadd.f32 %v1218_v47, %v1214_v46  ;;  %v1219_v61 = vmul.f32 %v2431_v16, %v1175_v45  ;;  %v1253_v45 = vld [vmem:[#allocation3 + $0x298] sm:$0xff]  ;;  %v1251_v16 = vld [vmem:[#allocation3 + $0x288] sm:$0xff] }
 0x54f   :  { %2440 = vtanh.f32 %v2979_v50  ;;  %v2985_v18 = vadd.f32 %v1221_v17, %v1217_v48 }
 0x550   :  { %2442 = vtanh.f32 %v2982_v53  ;;  %v2988_v10 = vadd.f32 %v1219_v61, %v1215_v52 }
 0x551   :  { %2444 = vtanh.f32 %v2985_v18 }
 0x552   :  { %2446 = vtanh.f32 %v2988_v10 }
 0x554   :  { %v2433_v12 = vpop.eup %2432 }
 0x555   :  { %v2435_v1 = vpop.eup %2434  ;;  %v1208_v56 = vmul.f32 0.5, %v2433_v12 }
 0x556   :  { %v2437_v57 = vpop.eup %2436  ;;  %v1206_v25 = vmul.f32 0.5, %v2435_v1 }
 0x557   :  { %v2439_v58 = vpop.eup %2438  ;;  %v1209_v5 = vmul.f32 0.5, %v2437_v57  ;;  %v1212_v6 = vadd.f32 0.5, %v1208_v56  ;;  %v1256_v57 = vld [vmem:[#allocation3 + $0x2b0] sm:$0xff] }
 0x558   :  { %v1210_v22 = vadd.f32 0.5, %v1206_v25  ;;  %v1207_v27 = vmul.f32 0.5, %v2439_v58  ;;  %v1254_v58 = vld [vmem:[#allocation3 + $0x2a0] sm:$0xff] }
 0x559   :  { %v2441_v13 = vpop.eup %2440  ;;  %v1213_v19 = vadd.f32 0.5, %v1209_v5 }
 0x55a   :  { %v2443_v20 = vpop.eup %2442  ;;  %v1211_v54 = vadd.f32 0.5, %v1207_v27  ;;  %v1232_v51 = vmul.f32 %v2441_v13, %v1212_v6  ;;  %v1257_v6 = vld [vmem:[#allocation3 + $0x2b8] sm:$0xff]  ;;  %v1255_v13 = vld [vmem:[#allocation3 + $0x2a8] sm:$0xff] }
 0x55b   :  { %v2445_v21 = vpop.eup %2444  ;;  %v1230_v23 = vmul.f32 %v2443_v20, %v1210_v22 }
 0x55c   :  { %v2447_v24 = vpop.eup %2446  ;;  %v1233_v55 = vmul.f32 %v2445_v21, %v1213_v19  ;;  %v1236_v34 = vmul.f32 %v1232_v51, %v2793_v26 }
 0x55d   :  { %v1231_v28 = vmul.f32 %v2447_v24, %v1211_v54  ;;  %v1234_v31 = vmul.f32 %v1230_v23, %v2791_v11 }
 0x55e   :  { %v1267_v29 = vpack.c.bf16 %v1233_v55, %v1232_v51  ;;  %v1237_v35 = vmul.f32 %v1233_v55, %v2799_v38 }
 0x55f   :  { %v1235_v63 = vmul.f32 %v1231_v28, %v2795_v30  ;;  %v1266_v32 = vpack.c.bf16 %v1231_v28, %v1230_v23 }
 0x561   :  { %v1238_v33 = vadd.f32 %v1235_v63, %v1234_v31  ;;  %2173 = vmatprep.subr.bf16.mxu1 %v1266_v32  ;;  %v1258_v31 = vld [vmem:[#allocation3 + $0x2c0] sm:$0xff] }
 0x562   :  { %2174 = vmatpush3.bf16.msra.mxu1 %v1266_v32  ;;  %v1261_v32 = vld [vmem:[#allocation3 + $0x2d8] sm:$0xff] }
 0x563   :  { %v1239_v36 = vadd.f32 %v1238_v33, %v1236_v34  ;;  %2175 = vmatprep.subr.bf16.mxu1 %v1267_v29 }
 0x565   :  { %v1240_v37 = vadd.f32 %v1239_v36, %v1237_v35  ;;  %v1259_v35 = vld [vmem:[#allocation3 + $0x2c8] sm:$0xff] }
 0x566   :  { %2176 = vmatpush3.bf16.msra.mxu1 %v1267_v29  ;;  %v1260_v29 = vld [vmem:[#allocation3 + $0x2d0] sm:$0xff] }
 0x567   :  { %v1241_v39 = vrot.slane %v1240_v37, 4 }
 0x569   :  { %v1242_v40 = vadd.f32 %v1241_v39, %v1240_v37  ;;  %2178 = vmatmul.mubr.msk.bf16.vlgmr.msra.gmra.mrb[32].mxu1 %vm127_vm0, %v2885_v60 }
 0x56a   :  { %2181 = vmatprep.mubr.msk.bf16.mxu1 %vm127_vm0, %v2892_v7 }
 0x56b   :  { %v1243_v41 = vrot.slane %v1242_v40, 2 }
 0x56d   :  { %v1244_v8 = vadd.f32 %v1243_v41, %v1242_v40 }
 0x56f   :  { %v1245_v9 = vrot.slane %v1244_v8, 1 }
 0x571   :  { %v1246_v14 = vadd.f32 %v1245_v9, %v1244_v8  ;;  %2182 = vmatmul.mubr.msk.bf16.gmra.mrb[36].mxu1 %vm127_vm0, %v2899_v2 }
 0x572   :  { %2185 = vmatprep.mubr.msk.bf16.mxu1 %vm127_vm0, %v2906_v59 }
 0x573   :  { %v1247_v42 = vadd.f32 %v1246_v14, %v2810_v49 }
 0x575   :  { %1248 = vst [vmem:[#allocation6 + $0x4] sm:$0x1] %v1247_v42 }
 0x579   :  { %2186 = vmatmul.mubr.msk.bf16.gmra.mrb[40].mxu1 %vm127_vm0, %v2914_v62 }
 0x57a   :  { %2189 = vmatprep.mubr.msk.bf16.mxu1 %vm127_vm0, %v2921_v0 }
 0x581   :  { %2190 = vmatmul.mubr.msk.bf16.gmra.mrb[44].mxu1 %vm127_vm0, %v2928_v3 }
 0x582   :  { %2217 = vmatprep.mubr.msk.bf16.mxu1 %vm127_vm0, %v2935_v4 }
 0x63c   :  { %v2179_v44 = vpop.f32.mrb[32].mxu1 }
 0x63d   :  { %v1367_v46 = vadd.f32 %v2179_v44, %v1252_v15  ;;  %v1302_v47 = vpop.f32.mrb[33].mxu1 }
 0x63e   :  { %v1365_v48 = vadd.f32 %v1302_v47, %v1250_v43  ;;  %v2180_v17 = vpop.f32.mrb[34].mxu1  ;;  %v1264_v43 = vld [vmem:[#allocation3 + $0x2f0] sm:$0xff] }
 0x63f   :  { %v1368_v52 = vadd.f32 %v2180_v17, %v1253_v45  ;;  %v1305_v61 = vpop.f32.mrb[35].mxu1  ;;  %v1383_v12 = vmul.f32 0.5, %v1367_v46  ;;  %v1262_v45 = vld [vmem:[#allocation3 + $0x2e0] sm:$0xff]  ;;  %v1265_v17 = vld [vmem:[#allocation3 + $0x2f8] sm:$0xff] }
 0x640   :  { %v1366_v1 = vadd.f32 %v1305_v61, %v1251_v16  ;;  %v1381_v56 = vmul.f32 0.5, %v1365_v48 }
 0x641   :  { %v1384_v25 = vmul.f32 0.5, %v1368_v52  ;;  %2448 = vtanh.f32 %v1383_v12 }
 0x642   :  { %v1382_v5 = vmul.f32 0.5, %v1366_v1  ;;  %2450 = vtanh.f32 %v1381_v56 }
 0x643   :  { %2452 = vtanh.f32 %v1384_v25  ;;  %v1263_v25 = vld [vmem:[#allocation3 + $0x2e8] sm:$0xff] }
 0x644   :  { %v2183_v4 = vpop.f32.mrb[36].mxu1  ;;  %2454 = vtanh.f32 %v1382_v5 }
 0x645   :  { %v1371_v22 = vadd.f32 %v2183_v4, %v1256_v57  ;;  %v1318_v27 = vpop.f32.mrb[37].mxu1 }
 0x646   :  { %v1369_v19 = vadd.f32 %v1318_v27, %v1254_v58  ;;  %v2184_v20 = vpop.f32.mrb[38].mxu1 }
 0x647   :  { %v1399_v54 = vmul.f32 0.5, %v1371_v22  ;;  %v1372_v21 = vadd.f32 %v2184_v20, %v1257_v6  ;;  %v1321_v23 = vpop.f32.mrb[39].mxu1 }
 0x648   :  { %v1397_v24 = vmul.f32 0.5, %v1369_v19  ;;  %v1370_v51 = vadd.f32 %v1321_v23, %v1255_v13 }
 0x649   :  { %2456 = vtanh.f32 %v1399_v54  ;;  %v1400_v55 = vmul.f32 0.5, %v1372_v21 }
 0x64a   :  { %2458 = vtanh.f32 %v1397_v24  ;;  %v1398_v28 = vmul.f32 0.5, %v1370_v51 }
 0x64b   :  { %2460 = vtanh.f32 %v1400_v55  ;;  %v2449_v36 = vpop.eup %2448 }
 0x64c   :  { %2462 = vtanh.f32 %v1398_v28  ;;  %v2187_v63 = vpop.f32.mrb[40].mxu1  ;;  %v2451_v8 = vpop.eup %2450  ;;  %v1391_v42 = vmul.f32 0.5, %v2449_v36 }
 0x64d   :  { %v1375_v33 = vadd.f32 %v2187_v63, %v1260_v29  ;;  %v1334_v34 = vpop.f32.mrb[41].mxu1  ;;  %v2453_v14 = vpop.eup %2452  ;;  %v1389_v47 = vmul.f32 0.5, %v2451_v8 }
 0x64e   :  { %v1373_v37 = vadd.f32 %v1334_v34, %v1258_v31  ;;  %v2188_v39 = vpop.f32.mrb[42].mxu1  ;;  %v2455_v15 = vpop.eup %2454  ;;  %v1395_v61 = vadd.f32 0.5, %v1391_v42  ;;  %v1392_v12 = vmul.f32 0.5, %v2453_v14 }
 0x64f   :  { %2464 = vtanh.f32 %v1375_v33  ;;  %v1376_v40 = vadd.f32 %v2188_v39, %v1261_v32  ;;  %v1337_v41 = vpop.f32.mrb[43].mxu1  ;;  %v1390_v5 = vmul.f32 0.5, %v2455_v15  ;;  %v1393_v23 = vadd.f32 0.5, %v1389_v47 }
 0x650   :  { %2466 = vtanh.f32 %v1373_v37  ;;  %v1374_v9 = vadd.f32 %v1337_v41, %v1259_v35  ;;  %v1396_v29 = vadd.f32 0.5, %v1392_v12 }
 0x651   :  { %2468 = vtanh.f32 %v1376_v40  ;;  %v1394_v37 = vadd.f32 0.5, %v1390_v5 }
 0x652   :  { %2470 = vtanh.f32 %v1374_v9 }
 0x653   :  { %v2457_v44 = vpop.eup %2456 }
 0x654   :  { %v2459_v46 = vpop.eup %2458  ;;  %v1407_v16 = vmul.f32 0.5, %v2457_v44  ;;  %v2191_v48 = vpop.f32.mrb[44].mxu1 }
 0x655   :  { %v2461_v52 = vpop.eup %2460  ;;  %v1405_v1 = vmul.f32 0.5, %v2459_v46  ;;  %v1379_v56 = vadd.f32 %v2191_v48, %v1264_v43  ;;  %v1350_v57 = vpop.f32.mrb[45].mxu1 }
 0x656   :  { %v2463_v58 = vpop.eup %2462  ;;  %v1411_v4 = vadd.f32 0.5, %v1407_v16  ;;  %v1408_v6 = vmul.f32 0.5, %v2461_v52  ;;  %v1377_v22 = vadd.f32 %v1350_v57, %v1262_v45  ;;  %v2192_v27 = vpop.f32.mrb[46].mxu1 }
 0x657   :  { %v1409_v13 = vadd.f32 0.5, %v1405_v1  ;;  %v1406_v19 = vmul.f32 0.5, %v2463_v58  ;;  %v1419_v20 = vmul.f32 0.5, %v1379_v56  ;;  %v1380_v54 = vadd.f32 %v2192_v27, %v1265_v17  ;;  %v1353_v21 = vpop.f32.mrb[47].mxu1 }
 0x658   :  { %v1412_v24 = vadd.f32 0.5, %v1408_v6  ;;  %v1417_v51 = vmul.f32 0.5, %v1377_v22  ;;  %v1378_v55 = vadd.f32 %v1353_v21, %v1263_v25  ;;  %v1435_v33 = vmul.f32 %v1411_v4, %v2979_v50 }
 0x659   :  { %v2465_v28 = vpop.eup %2464  ;;  %v1410_v31 = vadd.f32 0.5, %v1406_v19  ;;  %2472 = vtanh.f32 %v1419_v20  ;;  %v1420_v63 = vmul.f32 0.5, %v1380_v54  ;;  %v1433_v39 = vmul.f32 %v1409_v13, %v2982_v53 }
 0x65a   :  { %v2467_v32 = vpop.eup %2466  ;;  %v1439_v34 = vmul.f32 %v2465_v28, %v1395_v61  ;;  %2474 = vtanh.f32 %v1417_v51  ;;  %v1418_v35 = vmul.f32 0.5, %v1378_v55  ;;  %v1436_v8 = vmul.f32 %v1412_v24, %v2985_v18 }
 0x65b   :  { %v2469_v36 = vpop.eup %2468  ;;  %v1437_v40 = vmul.f32 %v2467_v32, %v1393_v23  ;;  %2476 = vtanh.f32 %v1420_v63  ;;  %v1434_v42 = vmul.f32 %v1410_v31, %v2988_v10 }
 0x65c   :  { %v2471_v41 = vpop.eup %2470  ;;  %v3016_v9 = vadd.f32 %v1439_v34, %v1435_v33  ;;  %v1440_v14 = vmul.f32 %v2469_v36, %v1396_v29  ;;  %2478 = vtanh.f32 %v1418_v35  ;;  %v1472_v34 = vld [vmem:[#allocation3 + $0x318] sm:$0xff]  ;;  %v1470_v36 = vld [vmem:[#allocation3 + $0x308] sm:$0xff] }
 0x65d   :  { %v3019_v15 = vadd.f32 %v1437_v40, %v1433_v39  ;;  %v1438_v50 = vmul.f32 %v2471_v41, %v1394_v37 }
 0x65e   :  { %2480 = vtanh.f32 %v3016_v9  ;;  %v3022_v43 = vadd.f32 %v1440_v14, %v1436_v8  ;;  %v1475_v14 = vld [vmem:[#allocation3 + $0x330] sm:$0xff] }
 0x65f   :  { %2482 = vtanh.f32 %v3019_v15  ;;  %v3025_v53 = vadd.f32 %v1438_v50, %v1434_v42 }
 0x660   :  { %2484 = vtanh.f32 %v3022_v43 }
 0x661   :  { %2486 = vtanh.f32 %v3025_v53 }
 0x663   :  { %v2473_v18 = vpop.eup %2472 }
 0x664   :  { %v2475_v44 = vpop.eup %2474  ;;  %v1427_v45 = vmul.f32 0.5, %v2473_v18  ;;  %v1476_v18 = vld [vmem:[#allocation3 + $0x338] sm:$0xff] }
 0x665   :  { %v2477_v46 = vpop.eup %2476  ;;  %v1425_v10 = vmul.f32 0.5, %v2475_v44 }
 0x666   :  { %v2479_v47 = vpop.eup %2478  ;;  %v1428_v16 = vmul.f32 0.5, %v2477_v46  ;;  %v1431_v48 = vadd.f32 0.5, %v1427_v45  ;;  %v1474_v46 = vld [vmem:[#allocation3 + $0x328] sm:$0xff] }
 0x667   :  { %v1429_v17 = vadd.f32 0.5, %v1425_v10  ;;  %v1426_v52 = vmul.f32 0.5, %v2479_v47 }
 0x668   :  { %v2481_v61 = vpop.eup %2480  ;;  %v1432_v12 = vadd.f32 0.5, %v1428_v16 }
 0x669   :  { %v2483_v1 = vpop.eup %2482  ;;  %v1430_v56 = vadd.f32 0.5, %v1426_v52  ;;  %v1451_v5 = vmul.f32 %v2481_v61, %v1431_v48 }
 0x66a   :  { %v2485_v57 = vpop.eup %2484  ;;  %v1449_v25 = vmul.f32 %v2483_v1, %v1429_v17 }
 0x66b   :  { %v2487_v58 = vpop.eup %2486  ;;  %v1452_v4 = vmul.f32 %v2485_v57, %v1432_v12  ;;  %v1455_v54 = vmul.f32 %v1451_v5, %v2793_v26  ;;  %v1477_v57 = vld [vmem:[#allocation3 + $0x340] sm:$0xff] }
 0x66c   :  { %v1450_v6 = vmul.f32 %v2487_v58, %v1430_v56  ;;  %v1453_v27 = vmul.f32 %v1449_v25, %v2791_v11  ;;  %v1479_v56 = vld [vmem:[#allocation3 + $0x350] sm:$0xff]  ;;  %v1480_v58 = vld [vmem:[#allocation3 + $0x358] sm:$0xff] }
 0x66d   :  { %v1486_v22 = vpack.c.bf16 %v1452_v4, %v1451_v5  ;;  %v1456_v21 = vmul.f32 %v1452_v4, %v2799_v38 }
 0x66e   :  { %v1454_v13 = vmul.f32 %v1450_v6, %v2795_v30  ;;  %v1485_v19 = vpack.c.bf16 %v1450_v6, %v1449_v25  ;;  %v1478_v6 = vld [vmem:[#allocation3 + $0x348] sm:$0xff] }
 0x670   :  { %v1457_v20 = vadd.f32 %v1454_v13, %v1453_v27  ;;  %2193 = vmatprep.subr.bf16.mxu0 %v1485_v19 }
 0x671   :  { %2194 = vmatpush3.bf16.msra.mxu0 %v1485_v19 }
 0x672   :  { %v1458_v23 = vadd.f32 %v1457_v20, %v1455_v54  ;;  %2195 = vmatprep.subr.bf16.mxu0 %v1486_v22 }
 0x674   :  { %v1459_v24 = vadd.f32 %v1458_v23, %v1456_v21 }
 0x675   :  { %2196 = vmatpush3.bf16.msra.mxu0 %v1486_v22 }
 0x676   :  { %v1460_v51 = vrot.slane %v1459_v24, 4 }
 0x678   :  { %v1461_v55 = vadd.f32 %v1460_v51, %v1459_v24  ;;  %2198 = vmatmul.mubr.msk.bf16.vlgmr.msra.gmra.mrb[48].mxu0 %vm127_vm0, %v2885_v60  ;;  %v1471_v60 = vld [vmem:[#allocation3 + $0x310] sm:$0xff] }
 0x679   :  { %2201 = vmatprep.mubr.msk.bf16.mxu0 %vm127_vm0, %v2892_v7  ;;  %v1469_v7 = vld [vmem:[#allocation3 + $0x300] sm:$0xff] }
 0x67a   :  { %v1462_v28 = vrot.slane %v1461_v55, 2 }
 0x67c   :  { %v1463_v29 = vadd.f32 %v1462_v28, %v1461_v55  ;;  %v1483_v55 = vld [vmem:[#allocation3 + $0x370] sm:$0xff] }
 0x67e   :  { %v1464_v31 = vrot.slane %v1463_v29, 1 }
 0x680   :  { %v1465_v63 = vadd.f32 %v1464_v31, %v1463_v29  ;;  %2202 = vmatmul.mubr.msk.bf16.gmra.mrb[52].mxu0 %vm127_vm0, %v2899_v2  ;;  %v1481_v29 = vld [vmem:[#allocation3 + $0x360] sm:$0xff] }
 0x681   :  { %2205 = vmatprep.mubr.msk.bf16.mxu0 %vm127_vm0, %v2906_v59 }
 0x682   :  { %v1466_v32 = vadd.f32 %v1465_v63, %v2810_v49 }
 0x684   :  { %1467 = vst [vmem:[#allocation6 + $0x5] sm:$0x1] %v1466_v32 }
 0x688   :  { %2206 = vmatmul.mubr.msk.bf16.gmra.mrb[56].mxu0 %vm127_vm0, %v2914_v62 }
 0x689   :  { %2209 = vmatprep.mubr.msk.bf16.mxu0 %vm127_vm0, %v2921_v0  ;;  %v1473_v0 = vld [vmem:[#allocation3 + $0x320] sm:$0xff] }
 0x690   :  { %2210 = vmatmul.mubr.msk.bf16.gmra.mrb[60].mxu0 %vm127_vm0, %v2928_v3 }
 0x74b   :  { %v2199_v33 = vpop.f32.mrb[48].mxu0 }
 0x74c   :  { %v1586_v2 = vadd.f32 %v2199_v33, %v1471_v60  ;;  %v1521_v35 = vpop.f32.mrb[49].mxu0 }
 0x74d   :  { %v1584_v59 = vadd.f32 %v1521_v35, %v1469_v7  ;;  %v2200_v37 = vpop.f32.mrb[50].mxu0  ;;  %v1484_v7 = vld [vmem:[#allocation3 + $0x378] sm:$0xff] }
 0x74e   :  { %v1587_v39 = vadd.f32 %v2200_v37, %v1472_v34  ;;  %v1524_v40 = vpop.f32.mrb[51].mxu0  ;;  %v1602_v41 = vmul.f32 0.5, %v1586_v2  ;;  %v1482_v37 = vld [vmem:[#allocation3 + $0x368] sm:$0xff] }
 0x74f   :  { %v1585_v8 = vadd.f32 %v1524_v40, %v1470_v36  ;;  %v1600_v62 = vmul.f32 0.5, %v1584_v59 }
 0x750   :  { %v1603_v42 = vmul.f32 0.5, %v1587_v39  ;;  %2488 = vtanh.f32 %v1602_v41 }
 0x751   :  { %v1601_v50 = vmul.f32 0.5, %v1585_v8  ;;  %2490 = vtanh.f32 %v1600_v62 }
 0x752   :  { %2492 = vtanh.f32 %v1603_v42 }
 0x753   :  { %v2203_v3 = vpop.f32.mrb[52].mxu0  ;;  %2494 = vtanh.f32 %v1601_v50 }
 0x754   :  { %v1590_v44 = vadd.f32 %v2203_v3, %v1475_v14  ;;  %v1537_v45 = vpop.f32.mrb[53].mxu0 }
 0x755   :  { %v1588_v10 = vadd.f32 %v1537_v45, %v1473_v0  ;;  %v2204_v47 = vpop.f32.mrb[54].mxu0 }
 0x756   :  { %v1618_v16 = vmul.f32 0.5, %v1590_v44  ;;  %v1591_v48 = vadd.f32 %v2204_v47, %v1476_v18  ;;  %v1540_v17 = vpop.f32.mrb[55].mxu0 }
 0x757   :  { %v1616_v52 = vmul.f32 0.5, %v1588_v10  ;;  %v1589_v61 = vadd.f32 %v1540_v17, %v1474_v46 }
 0x758   :  { %2496 = vtanh.f32 %v1618_v16  ;;  %v1619_v12 = vmul.f32 0.5, %v1591_v48 }
 0x759   :  { %2498 = vtanh.f32 %v1616_v52  ;;  %v1617_v1 = vmul.f32 0.5, %v1589_v61 }
 0x75a   :  { %2500 = vtanh.f32 %v1619_v12  ;;  %v2489_v22 = vpop.eup %2488 }
 0x75b   :  { %2502 = vtanh.f32 %v1617_v1  ;;  %v2207_v25 = vpop.f32.mrb[56].mxu0  ;;  %v2491_v54 = vpop.eup %2490  ;;  %v1610_v24 = vmul.f32 0.5, %v2489_v22 }
 0x75c   :  { %v1594_v5 = vadd.f32 %v2207_v25, %v1479_v56  ;;  %v1553_v4 = vpop.f32.mrb[57].mxu0  ;;  %v2493_v23 = vpop.eup %2492  ;;  %v1608_v63 = vmul.f32 0.5, %v2491_v54 }
 0x75d   :  { %v1592_v27 = vadd.f32 %v1553_v4, %v1477_v57  ;;  %v2208_v13 = vpop.f32.mrb[58].mxu0  ;;  %v2495_v51 = vpop.eup %2494  ;;  %v1614_v34 = vadd.f32 0.5, %v1610_v24  ;;  %v1611_v2 = vmul.f32 0.5, %v2493_v23 }
 0x75e   :  { %2504 = vtanh.f32 %v1594_v5  ;;  %v1595_v19 = vadd.f32 %v2208_v13, %v1480_v58  ;;  %v1556_v20 = vpop.f32.mrb[59].mxu0  ;;  %v1609_v40 = vmul.f32 0.5, %v2495_v51  ;;  %v1612_v44 = vadd.f32 0.5, %v1608_v63 }
 0x75f   :  { %2506 = vtanh.f32 %v1592_v27  ;;  %v1593_v21 = vadd.f32 %v1556_v20, %v1478_v6  ;;  %v1615_v16 = vadd.f32 0.5, %v1611_v2 }
 0x760   :  { %2508 = vtanh.f32 %v1595_v19  ;;  %v1613_v57 = vadd.f32 0.5, %v1609_v40 }
 0x761   :  { %2510 = vtanh.f32 %v1593_v21 }
 0x762   :  { %v2497_v28 = vpop.eup %2496 }
 0x763   :  { %v2499_v31 = vpop.eup %2498  ;;  %v1626_v32 = vmul.f32 0.5, %v2497_v28  ;;  %v2211_v60 = vpop.f32.mrb[60].mxu0 }
 0x764   :  { %v2501_v33 = vpop.eup %2500  ;;  %v1624_v35 = vmul.f32 0.5, %v2499_v31  ;;  %v1598_v36 = vadd.f32 %v2211_v60, %v1483_v55  ;;  %v1569_v59 = vpop.f32.mrb[61].mxu0 }
 0x765   :  { %v2503_v39 = vpop.eup %2502  ;;  %v1630_v41 = vadd.f32 0.5, %v1626_v32  ;;  %v1627_v8 = vmul.f32 0.5, %v2501_v33  ;;  %v1596_v62 = vadd.f32 %v1569_v59, %v1481_v29  ;;  %v2212_v14 = vpop.f32.mrb[62].mxu0 }
 0x766   :  { %v1628_v42 = vadd.f32 0.5, %v1624_v35  ;;  %v1625_v0 = vmul.f32 0.5, %v2503_v39  ;;  %v1638_v50 = vmul.f32 0.5, %v1598_v36  ;;  %v1599_v3 = vadd.f32 %v2212_v14, %v1484_v7  ;;  %v1572_v18 = vpop.f32.mrb[63].mxu0 }
 0x767   :  { %v1631_v45 = vadd.f32 0.5, %v1627_v8  ;;  %v1636_v46 = vmul.f32 0.5, %v1596_v62  ;;  %v1597_v10 = vadd.f32 %v1572_v18, %v1482_v37  ;;  %v1654_v61 = vmul.f32 %v1630_v41, %v3016_v9 }
 0x768   :  { %v2505_v47 = vpop.eup %2504  ;;  %v1629_v48 = vadd.f32 0.5, %v1625_v0  ;;  %2512 = vtanh.f32 %v1638_v50  ;;  %v1639_v17 = vmul.f32 0.5, %v1599_v3  ;;  %v1652_v25 = vmul.f32 %v1628_v42, %v3019_v15  ;;  %v2576_v50 = vld [vmem:[%s3119_s1 + $0x8] sm:$0xff]   ;;  %v2577_v3 = vld [vmem:[%s3119_s1 + $0x10] sm:$0xff]  }
 0x769   :  { %v2507_v52 = vpop.eup %2506  ;;  %v1658_v12 = vmul.f32 %v2505_v47, %v1614_v34  ;;  %2514 = vtanh.f32 %v1636_v46  ;;  %v1637_v1 = vmul.f32 0.5, %v1597_v10  ;;  %v1655_v4 = vmul.f32 %v1631_v45, %v3022_v43  ;;  %v2578_v10 = vld [vmem:[%s3119_s1 + $0x18] sm:$0xff]   ;;  %v2579_v47 = vld [vmem:[%s3119_s1 + $0x20] sm:$0xff]  }
 0x76a   :  { %v2509_v56 = vpop.eup %2508  ;;  %v1656_v58 = vmul.f32 %v2507_v52, %v1612_v44  ;;  %2516 = vtanh.f32 %v1639_v17  ;;  %v1653_v27 = vmul.f32 %v1629_v48, %v3025_v53  ;;  %v2580_v48 = vld [vmem:[%s3119_s1 + $0x28] sm:$0xff]   ;;  %v2581_v17 = vld [vmem:[%s3119_s1 + $0x30] sm:$0xff]   ;;  %v2582_v52 = vld [vmem:[%s3119_s1 + $0x38] sm:$0xff]   ;;  %s2635_s1 = smov [#allocation6]  }
 0x76b   :  { %v2511_v5 = vpop.eup %2510  ;;  %v3051_v6 = vadd.f32 %v1658_v12, %v1654_v61  ;;  %v1659_v22 = vmul.f32 %v2509_v56, %v1615_v16  ;;  %2518 = vtanh.f32 %v1637_v1  ;;  %v1690_v61 = vld [vmem:[#allocation3 + $0x390] sm:$0xff]  ;;  %v1688_v12 = vld [vmem:[#allocation3 + $0x380] sm:$0xff]  ;;  %v1691_v56 = vld [vmem:[#allocation3 + $0x398] sm:$0xff]  ;;  %s1912_s23 = sshll.u32 %s2635_s1, 4  ;;  %s1913_s23 = int_to_ptr.vmem [resolvable:$true] %s1912_s23 }
 0x76c   :  { %v3054_v13 = vadd.f32 %v1656_v58, %v1652_v25  ;;  %v1657_v9 = vmul.f32 %v2511_v5, %v1613_v57  ;;  %v1689_v58 = vld [vmem:[#allocation3 + $0x388] sm:$0xff]  ;;  %s2605_s24 = scalar_lea.vmem %s1913_s23, 128  ;;  %p2610_p9 = scmp.lt.s32.totalorder %s1913_s23, %s1913_s23 }
 0x76d   :  { %2520 = vtanh.f32 %v3051_v6  ;;  %v3057_v19 = vadd.f32 %v1659_v22, %v1655_v4  ;;  %p2606_p8 = scmp.ne.s32.totalorder %s1913_s23, %s2605_s24  ;;  %p2611_p10 = scmp.lt.s32.totalorder %s2605_s24, %s2605_s24 }
 0x76e   :  { %2522 = vtanh.f32 %v3054_v13  ;;  %v3060_v15 = vadd.f32 %v1657_v9, %v1653_v27 }
 0x76f   :  { %2524 = vtanh.f32 %v3057_v19  ;;  %p2612_p11 = por %p2611_p10, %p2610_p9 }
 0x770   :  { %2526 = vtanh.f32 %v3060_v15 }
 0x771   :  { %p2613_p12 = pnand %p2612_p11, %p2606_p8 }
 0x772   :  { %v2513_v43 = vpop.eup %2512 }
 0x773   :  { %v2515_v20 = vpop.eup %2514  ;;  %v1646_v54 = vmul.f32 0.5, %v2513_v43 }
 0x774   :  { %v2517_v21 = vpop.eup %2516  ;;  %v1644_v53 = vmul.f32 0.5, %v2515_v20 }
 0x775   :  { %v2519_v23 = vpop.eup %2518  ;;  %v1647_v24 = vmul.f32 0.5, %v2517_v21  ;;  %v1650_v51 = vadd.f32 0.5, %v1646_v54  ;;  %v1694_v54 = vld [vmem:[#allocation3 + $0x3b0] sm:$0xff] }
 0x776   :  { %v1648_v55 = vadd.f32 0.5, %v1644_v53  ;;  %v1645_v28 = vmul.f32 0.5, %v2519_v23  ;;  %v1692_v53 = vld [vmem:[#allocation3 + $0x3a0] sm:$0xff] }
 0x777   :  { %v2521_v29 = vpop.eup %2520  ;;  %v1651_v31 = vadd.f32 0.5, %v1647_v24 }
 0x778   :  { %v2523_v63 = vpop.eup %2522  ;;  %v1649_v32 = vadd.f32 0.5, %v1645_v28  ;;  %v1670_v34 = vmul.f32 %v2521_v29, %v1650_v51  ;;  %v1695_v51 = vld [vmem:[#allocation3 + $0x3b8] sm:$0xff]  ;;  %v1693_v29 = vld [vmem:[#allocation3 + $0x3a8] sm:$0xff] }
 0x779   :  { %v2525_v60 = vpop.eup %2524  ;;  %v1668_v7 = vmul.f32 %v2523_v63, %v1648_v55 }
 0x77a   :  { %v2527_v33 = vpop.eup %2526  ;;  %v1671_v2 = vmul.f32 %v2525_v60, %v1651_v31  ;;  %v1674_v41 = vmul.f32 %v1670_v34, %v2793_v26 }
 0x77b   :  { %v1669_v35 = vmul.f32 %v2527_v33, %v1649_v32  ;;  %v1672_v59 = vmul.f32 %v1668_v7, %v2791_v11 }
 0x77c   :  { %v1705_v36 = vpack.c.bf16 %v1671_v2, %v1670_v34  ;;  %v1675_v8 = vmul.f32 %v1671_v2, %v2799_v38 }
 0x77d   :  { %v1673_v37 = vmul.f32 %v1669_v35, %v2795_v30  ;;  %v1704_v39 = vpack.c.bf16 %v1669_v35, %v1668_v7 }
 0x77f   :  { %v1676_v40 = vadd.f32 %v1673_v37, %v1672_v59  ;;  %2213 = vmatprep.subr.bf16.mxu1 %v1704_v39  ;;  %v1696_v59 = vld [vmem:[#allocation3 + $0x3c0] sm:$0xff] }
 0x780   :  { %2214 = vmatpush3.bf16.msra.mxu1 %v1704_v39  ;;  %v1699_v39 = vld [vmem:[#allocation3 + $0x3d8] sm:$0xff] }
 0x781   :  { %v1677_v62 = vadd.f32 %v1676_v40, %v1674_v41  ;;  %2215 = vmatprep.subr.bf16.mxu1 %v1705_v36 }
 0x783   :  { %v1678_v14 = vadd.f32 %v1677_v62, %v1675_v8  ;;  %v1697_v8 = vld [vmem:[#allocation3 + $0x3c8] sm:$0xff] }
 0x784   :  { %2216 = vmatpush3.bf16.msra.mxu1 %v1705_v36  ;;  %v1698_v36 = vld [vmem:[#allocation3 + $0x3d0] sm:$0xff] }
 0x785   :  { %v1679_v42 = vrot.slane %v1678_v14, 4 }
 0x787   :  { %v1680_v0 = vadd.f32 %v1679_v42, %v1678_v14  ;;  %2218 = vmatmul.mubr.msk.bf16.vlgmr.msra.gmra.mrb[48].mxu1 %vm127_vm0, %v2576_v50 }
 0x788   :  { %2221 = vmatprep.mubr.msk.bf16.mxu1 %vm127_vm0, %v2577_v3 }
 0x789   :  { %v1681_v18 = vrot.slane %v1680_v0, 2 }
 0x78b   :  { %v1682_v44 = vadd.f32 %v1681_v18, %v1680_v0 }
 0x78d   :  { %v1683_v45 = vrot.slane %v1682_v44, 1 }
 0x78f   :  { %v1684_v46 = vadd.f32 %v1683_v45, %v1682_v44  ;;  %2222 = vmatmul.mubr.msk.bf16.gmra.mrb[52].mxu1 %vm127_vm0, %v2578_v10  ;;  %v1702_v10 = vld [vmem:[#allocation3 + $0x3f0] sm:$0xff] }
 0x790   :  { %2225 = vmatprep.mubr.msk.bf16.mxu1 %vm127_vm0, %v2579_v47 }
 0x791   :  { %v1685_v16 = vadd.f32 %v1684_v46, %v2810_v49 }
 0x793   :  { %1686 = vst [vmem:[#allocation6 + $0x6] sm:$0x1] %v1685_v16  ;;  %v1700_v16 = vld [vmem:[#allocation3 + $0x3e0] sm:$0xff] }
 0x797   :  { %2226 = vmatmul.mubr.msk.bf16.gmra.mrb[56].mxu1 %vm127_vm0, %v2580_v48 }
 0x798   :  { %2229 = vmatprep.mubr.msk.bf16.mxu1 %vm127_vm0, %v2581_v17 }
 0x79f   :  { %2230 = vmatmul.mubr.msk.bf16.gmra.mrb[60].mxu1 %vm127_vm0, %v2582_v52 }
 0x85a   :  { %v2219_v1 = vpop.f32.mrb[48].mxu1 }
 0x85b   :  { %v1805_v57 = vadd.f32 %v2219_v1, %v1690_v61  ;;  %v1740_v25 = vpop.f32.mrb[49].mxu1 }
 0x85c   :  { %v1803_v5 = vadd.f32 %v1740_v25, %v1688_v12  ;;  %v2220_v4 = vpop.f32.mrb[50].mxu1  ;;  %v1703_v12 = vld [vmem:[#allocation3 + $0x3f8] sm:$0xff] }
 0x85d   :  { %v1806_v22 = vadd.f32 %v2220_v4, %v1691_v56  ;;  %v1743_v27 = vpop.f32.mrb[51].mxu1  ;;  %v1821_v9 = vmul.f32 0.5, %v1805_v57  ;;  %v1701_v4 = vld [vmem:[#allocation3 + $0x3e8] sm:$0xff] }
 0x85e   :  { %v1804_v43 = vadd.f32 %v1743_v27, %v1689_v58  ;;  %v1819_v20 = vmul.f32 0.5, %v1803_v5 }
 0x85f   :  { %v1822_v21 = vmul.f32 0.5, %v1806_v22  ;;  %2528 = vtanh.f32 %v1821_v9 }
 0x860   :  { %v1820_v23 = vmul.f32 0.5, %v1804_v43  ;;  %2530 = vtanh.f32 %v1819_v20 }
 0x861   :  { %2532 = vtanh.f32 %v1822_v21 }
 0x862   :  { %v2223_v24 = vpop.f32.mrb[52].mxu1  ;;  %2534 = vtanh.f32 %v1820_v23 }
 0x863   :  { %v1809_v55 = vadd.f32 %v2223_v24, %v1694_v54  ;;  %v1756_v28 = vpop.f32.mrb[53].mxu1 }
 0x864   :  { %v1807_v31 = vadd.f32 %v1756_v28, %v1692_v53  ;;  %v2224_v63 = vpop.f32.mrb[54].mxu1 }
 0x865   :  { %v1837_v32 = vmul.f32 0.5, %v1809_v55  ;;  %v1810_v60 = vadd.f32 %v2224_v63, %v1695_v51  ;;  %v1759_v7 = vpop.f32.mrb[55].mxu1 }
 0x866   :  { %v1835_v33 = vmul.f32 0.5, %v1807_v31  ;;  %v1808_v34 = vadd.f32 %v1759_v7, %v1693_v29 }
 0x867   :  { %2536 = vtanh.f32 %v1837_v32  ;;  %v1838_v2 = vmul.f32 0.5, %v1810_v60 }
 0x868   :  { %2538 = vtanh.f32 %v1835_v33  ;;  %v1836_v35 = vmul.f32 0.5, %v1808_v34 }
 0x869   :  { %2540 = vtanh.f32 %v1838_v2  ;;  %v2529_v62 = vpop.eup %2528 }
 0x86a   :  { %2542 = vtanh.f32 %v1836_v35  ;;  %v2227_v37 = vpop.f32.mrb[56].mxu1  ;;  %v2531_v3 = vpop.eup %2530  ;;  %v1829_v45 = vmul.f32 0.5, %v2529_v62 }
 0x86b   :  { %v1813_v40 = vadd.f32 %v2227_v37, %v1698_v36  ;;  %v1772_v41 = vpop.f32.mrb[57].mxu1  ;;  %v2533_v44 = vpop.eup %2532  ;;  %v1827_v17 = vmul.f32 0.5, %v2531_v3 }
 0x86c   :  { %v1811_v14 = vadd.f32 %v1772_v41, %v1696_v59  ;;  %v2228_v42 = vpop.f32.mrb[58].mxu1  ;;  %v2535_v46 = vpop.eup %2534  ;;  %v1833_v56 = vadd.f32 0.5, %v1829_v45  ;;  %v1830_v57 = vmul.f32 0.5, %v2533_v44 }
 0x86d   :  { %2544 = vtanh.f32 %v1813_v40  ;;  %v1814_v0 = vadd.f32 %v2228_v42, %v1699_v39  ;;  %v1775_v50 = vpop.f32.mrb[59].mxu1  ;;  %v1828_v27 = vmul.f32 0.5, %v2535_v46  ;;  %v1831_v55 = vadd.f32 0.5, %v1827_v17 }
 0x86e   :  { %2546 = vtanh.f32 %v1811_v14  ;;  %v1812_v18 = vadd.f32 %v1775_v50, %v1697_v8  ;;  %v1834_v32 = vadd.f32 0.5, %v1830_v57 }
 0x86f   :  { %2548 = vtanh.f32 %v1814_v0  ;;  %v1832_v59 = vadd.f32 0.5, %v1828_v27 }
 0x870   :  { %2550 = vtanh.f32 %v1812_v18 }
 0x871   :  { %v2537_v47 = vpop.eup %2536 }
 0x872   :  { %v2539_v48 = vpop.eup %2538  ;;  %v1845_v52 = vmul.f32 0.5, %v2537_v47  ;;  %v2231_v61 = vpop.f32.mrb[60].mxu1 }
 0x873   :  { %v2541_v1 = vpop.eup %2540  ;;  %v1843_v25 = vmul.f32 0.5, %v2539_v48  ;;  %v1817_v58 = vadd.f32 %v2231_v61, %v1702_v10  ;;  %v1788_v5 = vpop.f32.mrb[61].mxu1 }
 0x874   :  { %v2543_v22 = vpop.eup %2542  ;;  %v1849_v9 = vadd.f32 0.5, %v1845_v52  ;;  %v1846_v43 = vmul.f32 0.5, %v2541_v1  ;;  %v1815_v20 = vadd.f32 %v1788_v5, %v1700_v16  ;;  %v2232_v54 = vpop.f32.mrb[62].mxu1 }
 0x875   :  { %v1847_v21 = vadd.f32 0.5, %v1843_v25  ;;  %v1844_v53 = vmul.f32 0.5, %v2543_v22  ;;  %v1857_v23 = vmul.f32 0.5, %v1817_v58  ;;  %v1818_v24 = vadd.f32 %v2232_v54, %v1703_v12  ;;  %v1791_v51 = vpop.f32.mrb[63].mxu1 }
 0x876   :  { %v1850_v28 = vadd.f32 0.5, %v1846_v43  ;;  %v1855_v29 = vmul.f32 0.5, %v1815_v20  ;;  %v1816_v31 = vadd.f32 %v1791_v51, %v1701_v4  ;;  %v1873_v34 = vmul.f32 %v1849_v9, %v3051_v6 }
 0x877   :  { %v2545_v63 = vpop.eup %2544  ;;  %v1848_v60 = vadd.f32 0.5, %v1844_v53  ;;  %2552 = vtanh.f32 %v1857_v23  ;;  %v1858_v7 = vmul.f32 0.5, %v1818_v24  ;;  %v1871_v37 = vmul.f32 %v1847_v21, %v3054_v13 }
 0x878   :  { %v2547_v33 = vpop.eup %2546  ;;  %v1877_v2 = vmul.f32 %v2545_v63, %v1833_v56  ;;  %2554 = vtanh.f32 %v1855_v29  ;;  %v1856_v35 = vmul.f32 0.5, %v1816_v31  ;;  %v1874_v41 = vmul.f32 %v1850_v28, %v3057_v19 }
 0x879   :  { %v2549_v36 = vpop.eup %2548  ;;  %v1875_v39 = vmul.f32 %v2547_v33, %v1831_v55  ;;  %2556 = vtanh.f32 %v1858_v7  ;;  %v1872_v14 = vmul.f32 %v1848_v60, %v3060_v15 }
 0x87a   :  { %v2551_v40 = vpop.eup %2550  ;;  %v1881_v8 = vadd.f32 %v1877_v2, %v1873_v34  ;;  %v1878_v62 = vmul.f32 %v2549_v36, %v1834_v32  ;;  %2558 = vtanh.f32 %v1856_v35 }
 0x87b   :  { %v1879_v42 = vadd.f32 %v1875_v39, %v1871_v37  ;;  %v1876_v0 = vmul.f32 %v2551_v40, %v1832_v59 }
 0x87c   :  { %2560 = vtanh.f32 %v1881_v8  ;;  %v1882_v6 = vadd.f32 %v1878_v62, %v1874_v41 }
 0x87d   :  { %2562 = vtanh.f32 %v1879_v42  ;;  %v1880_v50 = vadd.f32 %v1876_v0, %v1872_v14 }
 0x87e   :  { %2564 = vtanh.f32 %v1882_v6 }
 0x87f   :  { %2566 = vtanh.f32 %v1880_v50 }
 0x881   :  { %v2553_v3 = vpop.eup %2552 }
 0x882   :  { %v2555_v13 = vpop.eup %2554  ;;  %v1865_v18 = vmul.f32 0.5, %v2553_v3 }
 0x883   :  { %v2557_v44 = vpop.eup %2556  ;;  %v1863_v45 = vmul.f32 0.5, %v2555_v13 }
 0x884   :  { %v2559_v46 = vpop.eup %2558  ;;  %v1869_v19 = vadd.f32 0.5, %v1865_v18  ;;  %v1866_v10 = vmul.f32 0.5, %v2557_v44 }
 0x885   :  { %v1867_v47 = vadd.f32 0.5, %v1863_v45  ;;  %v1864_v16 = vmul.f32 0.5, %v2559_v46 }
 0x886   :  { %v2561_v48 = vpop.eup %2560  ;;  %v1870_v15 = vadd.f32 0.5, %v1866_v10 }
 0x887   :  { %v2563_v17 = vpop.eup %2562  ;;  %v1889_v52 = vmul.f32 %v2561_v48, %v1869_v19  ;;  %v1868_v61 = vadd.f32 0.5, %v1864_v16 }
 0x888   :  { %v2565_v12 = vpop.eup %2564  ;;  %v1887_v1 = vmul.f32 %v2563_v17, %v1867_v47 }
 0x889   :  { %v2567_v56 = vpop.eup %2566  ;;  %v1890_v57 = vmul.f32 %v2565_v12, %v1870_v15  ;;  %v1893_v4 = vmul.f32 %v1889_v52, %v2793_v26 }
 0x88a   :  { %v1888_v25 = vmul.f32 %v2567_v56, %v1868_v61  ;;  %v1891_v58 = vmul.f32 %v1887_v1, %v2791_v11 }
 0x88b   :  { %v1894_v27 = vmul.f32 %v1890_v57, %v2799_v38 }
 0x88c   :  { %v1892_v5 = vmul.f32 %v1888_v25, %v2795_v30 }
 0x88e   :  { %v1895_v22 = vadd.f32 %v1892_v5, %v1891_v58 }
 0x890   :  { %v1896_v9 = vadd.f32 %v1895_v22, %v1893_v4 }
 0x892   :  { %v1897_v43 = vadd.f32 %v1896_v9, %v1894_v27 }
 0x894   :  { %v1898_v20 = vrot.slane %v1897_v43, 4 }
 0x896   :  { %v1899_v54 = vadd.f32 %v1898_v20, %v1897_v43 }
 0x898   :  { %v1900_v21 = vrot.slane %v1899_v54, 2 }
 0x89a   :  { %v1901_v53 = vadd.f32 %v1900_v21, %v1899_v54 }
 0x89c   :  { %v1902_v23 = vrot.slane %v1901_v53, 1 }
 0x89e   :  { %v1903_v24 = vadd.f32 %v1902_v23, %v1901_v53 }
 0x8a0   :  { %v1904_v51 = vadd.f32 %v1903_v24, %v2810_v49 }
 0x8a2   :  { %1905 = vst [vmem:[#allocation6 + $0x7] sm:$0x1] %v1904_v51 }
 0x8a3   :  { %2616 = shalt.err (!%p2613_p12)
}
 0x8a4   :  { %s2617_s27 = scalar_lea.hbm %s3124_s6, 128 }
 0x8a5   :  { %p2618_p13 = scmp.ne.s32.totalorder %s3124_s6, %s2617_s27  ;;  %p2621_p0 = scmp.lt.u32.totalorder %s2617_s27, %s3124_s6 }
 0x8a7   :  { %p2623_p1 = pnand %p2621_p0, %p2618_p13 }
 0x8a9   :  { %2626 = shalt.err (!%p2623_p1)
}
 0x8aa   :  { %1915 = dma.vmem_to_hbm [thread:$0]  %s1913_s23, 128, %s3124_s6, [#allocation5]  }
 0x8ab   :  { %2629 = dma.done.wait [#allocation5], 128  }
 0x8ac   :  { %2630 = vsyncadd [#allocation5], 4294967168 }
 0x8ad   :  { %1919 = vsyncpa [#allocation4], 1 }
 0x8ae   :  { %1920 = vsyncpa [#allocation5], 1 }

</bundles_post_ra>
